<compile_context>
chip_gen: v7x
topology: tpu7x:2x2x1
jax: 0.10.0
libtpu: 0.0.40
codegen_flags: <defaults>
</compile_context>

<pallas_src>
import jax
import jax.numpy as jnp
from jax.experimental import pallas as pl
from jax.experimental.pallas import tpu as pltpu

H1, H2, OUT = 1024, 512, 1     # fc1/fc2/fc3 widths from the PyTorch module
OUT_PAD = 128                  # lane-dense padded output width (sliced to 1 outside)


def _round_up(x, m):
    return (x + m - 1) // m * m


def critic_kernel(obs_ref, act_ref, w1o_ref, w1a_ref, b1_ref,
                  w2_ref, b2_ref, w3_ref, b3_ref, out_ref):
    # fc1 on the (implicitly) concatenated [obs, act] input, as a split matmul.
    h1 = (jnp.dot(obs_ref[...], w1o_ref[...], preferred_element_type=jnp.float32)
          + jnp.dot(act_ref[...], w1a_ref[...], preferred_element_type=jnp.float32)
          + b1_ref[...])
    h1 = jnp.maximum(h1, 0.0).astype(jnp.bfloat16)                     # (TB, 1024)

    # fc2 + relu
    h2 = jnp.dot(h1, w2_ref[...], preferred_element_type=jnp.float32) + b2_ref[...]
    h2 = jnp.maximum(h2, 0.0).astype(jnp.bfloat16)                     # (TB, 512)

    # fc3 (Q value).  w3/b3 are zero-padded to 128 output lanes -> unmasked store.
    q = jnp.dot(h2, w3_ref[...], preferred_element_type=jnp.float32) + b3_ref[...]
    out_ref[...] = q.astype(out_ref.dtype)                             # (TB, 128)


def init_critic_params(key, n_agents, obs_dim, act_dim):
    """Deterministic synthetic init (PyTorch Linear-style uniform fan-in bounds).

    Weights are stored as (in, out) == W.T relative to torch's (out, in)."""
    d_in = (obs_dim + act_dim) * n_agents
    ks = jax.random.split(key, 6)

    def linear(kw, kb, fan_in, fan_out):
        bound = 1.0 / jnp.sqrt(jnp.float32(fan_in))
        w = jax.random.uniform(kw, (fan_in, fan_out), jnp.float32, -bound, bound)
        b = jax.random.uniform(kb, (fan_out,), jnp.float32, -bound, bound)
        return w, b

    w1, b1 = linear(ks[0], ks[1], d_in, H1)
    w2, b2 = linear(ks[2], ks[3], H1, H2)
    w3, b3 = linear(ks[4], ks[5], H2, OUT)
    return (w1, b1, w2, b2, w3, b3)


def prepare_params(params, d_obs, d_act):
    """One-time layout prep: split fc1, cast weights to bf16, pad K and N to 128."""
    w1, b1, w2, b2, w3, b3 = params
    bf = jnp.bfloat16
    d_obs_p = _round_up(d_obs, 128)
    d_act_p = _round_up(d_act, 128)

    w1o = jnp.zeros((d_obs_p, H1), bf).at[:d_obs].set(w1[:d_obs].astype(bf))
    w1a = jnp.zeros((d_act_p, H1), bf).at[:d_act].set(w1[d_obs:].astype(bf))
    w2p = w2.astype(bf)
    w3p = jnp.zeros((H2, OUT_PAD), bf).at[:, :OUT].set(w3.astype(bf))

    b1p = b1.reshape(1, H1).astype(jnp.float32)
    b2p = b2.reshape(1, H2).astype(jnp.float32)
    b3p = jnp.zeros((1, OUT_PAD), jnp.float32).at[:, :OUT].set(b3.reshape(1, OUT))
    return (w1o, w1a, b1p, w2p, b2p, w3p, b3p)


def critic_forward(obs, act, packed, *, block_b=512):
    """obs: (B, obs_dim*n_agents) f32, act: (B, act_dim*n_agents) f32 -> (B, 1) f32."""
    w1o, w1a, b1, w2, b2, w3, b3 = packed
    B, d_obs = obs.shape
    d_act = act.shape[1]
    d_obs_p, d_act_p = w1o.shape[0], w1a.shape[0]

    # Batch tile: <= block_b rows, multiple of 8 sublanes; pad B up to a whole tile.
    tb = min(block_b, _round_up(B, 8))
    Bp = _round_up(B, tb)

    obs_p = jnp.zeros((Bp, d_obs_p), jnp.bfloat16).at[:B, :d_obs].set(
        obs.astype(jnp.bfloat16))
    act_p = jnp.zeros((Bp, d_act_p), jnp.bfloat16).at[:B, :d_act].set(
        act.astype(jnp.bfloat16))

    out = pl.pallas_call(
        critic_kernel,
        out_shape=jax.ShapeDtypeStruct((Bp, OUT_PAD), jnp.float32),
        grid=(Bp // tb,),
        in_specs=[
            pl.BlockSpec((tb, d_obs_p), lambda i: (i, 0)),      # obs tile
            pl.BlockSpec((tb, d_act_p), lambda i: (i, 0)),      # act tile
            pl.BlockSpec((d_obs_p, H1), lambda i: (0, 0)),      # w1 (obs part), DMA once
            pl.BlockSpec((d_act_p, H1), lambda i: (0, 0)),      # w1 (act part), DMA once
            pl.BlockSpec((1, H1), lambda i: (0, 0)),            # b1
            pl.BlockSpec((H1, H2), lambda i: (0, 0)),           # w2
            pl.BlockSpec((1, H2), lambda i: (0, 0)),            # b2
            pl.BlockSpec((H2, OUT_PAD), lambda i: (0, 0)),      # w3 (lane-padded)
            pl.BlockSpec((1, OUT_PAD), lambda i: (0, 0)),       # b3 (lane-padded)
        ],
        out_specs=pl.BlockSpec((tb, OUT_PAD), lambda i: (i, 0)),
        compiler_params=pltpu.CompilerParams(
            dimension_semantics=("parallel",),   # batch tiles are independent (megacore)
        ),
    )(obs_p, act_p, w1o, w1a, b1, w2, b2, w3, b3)

    return out[:B, :OUT]


def critic_reference(obs, act, params):
    """Pure-JAX reference mirroring the kernel numerics (bf16 matmuls, f32 accumulate)."""
    w1, b1, w2, b2, w3, b3 = params
    bf = jnp.bfloat16
    x = jnp.concatenate([obs, act], axis=1).astype(bf)
    h1 = jnp.maximum(
        jnp.dot(x, w1.astype(bf), preferred_element_type=jnp.float32) + b1, 0.0)
    h2 = jnp.maximum(
        jnp.dot(h1.astype(bf), w2.astype(bf), preferred_element_type=jnp.float32) + b2,
        0.0)
    return jnp.dot(h2.astype(bf), w3.astype(bf),
                   preferred_element_type=jnp.float32) + b3


if __name__ == "__main__":
    n_agents, obs_dim, act_dim, B = 3, 16, 8, 4

    key = jax.random.PRNGKey(0)
    k_params, k_obs, k_act = jax.random.split(key, 3)
    params = init_critic_params(k_params, n_agents, obs_dim, act_dim)

    obs = jax.random.normal(k_obs, (B, obs_dim * n_agents), jnp.float32)
    act = jax.random.uniform(k_act, (B, act_dim * n_agents), jnp.float32)

    packed = prepare_params(params, obs.shape[1], act.shape[1])

    q = critic_forward(obs, act, packed)
    q = jax.block_until_ready(q)

    ref = critic_reference(obs, act, params)
    assert q.shape == (B, 1), q.shape
    assert jnp.allclose(q, ref, atol=1e-3, rtol=1e-3), "mismatch vs JAX reference"

    print("KERNEL_OK")
</pallas_src>

<mosaic_0001>
module attributes {stable_mosaic.version = 11 : i64} {
  func.func @critic_kernel(%arg0: i32, %arg1: memref<8x128xbf16, #tpu.memory_space<vmem>>, %arg2: memref<8x128xbf16, #tpu.memory_space<vmem>>, %arg3: memref<128x1024xbf16, #tpu.memory_space<vmem>>, %arg4: memref<128x1024xbf16, #tpu.memory_space<vmem>>, %arg5: memref<1x1024xf32, #tpu.memory_space<vmem>>, %arg6: memref<1024x512xbf16, #tpu.memory_space<vmem>>, %arg7: memref<1x512xf32, #tpu.memory_space<vmem>>, %arg8: memref<512x128xbf16, #tpu.memory_space<vmem>>, %arg9: memref<1x128xf32, #tpu.memory_space<vmem>>, %arg10: memref<8x128xf32, #tpu.memory_space<vmem>>) attributes {dimension_semantics = [#tpu.dimension_semantics<parallel>], iteration_bounds = array<i64: 1>, scalar_prefetch = 0 : i64, scratch_operands = 0 : i64, tpu.core_type = #tpu.core_type<tc>, window_params = [{transform_indices = @transform_0, window_bounds = array<i64: 8, 128>}, {transform_indices = @transform_1, window_bounds = array<i64: 8, 128>}, {pipeline_mode = #tpu.pipeline_mode<synchronous>, transform_indices = @transform_2, window_bounds = array<i64: 128, 1024>}, {pipeline_mode = #tpu.pipeline_mode<synchronous>, transform_indices = @transform_3, window_bounds = array<i64: 128, 1024>}, {pipeline_mode = #tpu.pipeline_mode<synchronous>, transform_indices = @transform_4, window_bounds = array<i64: 1, 1024>}, {pipeline_mode = #tpu.pipeline_mode<synchronous>, transform_indices = @transform_5, window_bounds = array<i64: 1024, 512>}, {pipeline_mode = #tpu.pipeline_mode<synchronous>, transform_indices = @transform_6, window_bounds = array<i64: 1, 512>}, {pipeline_mode = #tpu.pipeline_mode<synchronous>, transform_indices = @transform_7, window_bounds = array<i64: 512, 128>}, {pipeline_mode = #tpu.pipeline_mode<synchronous>, transform_indices = @transform_8, window_bounds = array<i64: 1, 128>}, {transform_indices = @transform_9, window_bounds = array<i64: 8, 128>}]} {
    %c0 = arith.constant 0 : index
    %c0_0 = arith.constant 0 : index
    %0 = vector.load %arg1[%c0, %c0_0] : memref<8x128xbf16, #tpu.memory_space<vmem>>, vector<8x128xbf16>
    %c0_1 = arith.constant 0 : index
    %c0_2 = arith.constant 0 : index
    %1 = vector.load %arg3[%c0_1, %c0_2] : memref<128x1024xbf16, #tpu.memory_space<vmem>>, vector<128x1024xbf16>
    %cst = arith.constant dense<0.000000e+00> : vector<8x1024xf32>
    %2 = tpu.matmul %0, %1, %cst {dimension_numbers = #tpu.dot_dimension_numbers<[1], [0], [0], [1], [0, 0, 1, 1], [], []>} : vector<8x128xbf16>, vector<128x1024xbf16>, vector<8x1024xf32> -> vector<8x1024xf32>
    %c0_3 = arith.constant 0 : index
    %c0_4 = arith.constant 0 : index
    %3 = vector.load %arg2[%c0_3, %c0_4] : memref<8x128xbf16, #tpu.memory_space<vmem>>, vector<8x128xbf16>
    %c0_5 = arith.constant 0 : index
    %c0_6 = arith.constant 0 : index
    %4 = vector.load %arg4[%c0_5, %c0_6] : memref<128x1024xbf16, #tpu.memory_space<vmem>>, vector<128x1024xbf16>
    %cst_7 = arith.constant dense<0.000000e+00> : vector<8x1024xf32>
    %5 = tpu.matmul %3, %4, %cst_7 {dimension_numbers = #tpu.dot_dimension_numbers<[1], [0], [0], [1], [0, 0, 1, 1], [], []>} : vector<8x128xbf16>, vector<128x1024xbf16>, vector<8x1024xf32> -> vector<8x1024xf32>
    %6 = arith.addf %2, %5 : vector<8x1024xf32>
    %c0_8 = arith.constant 0 : index
    %c0_9 = arith.constant 0 : index
    %7 = vector.load %arg5[%c0_8, %c0_9] : memref<1x1024xf32, #tpu.memory_space<vmem>>, vector<1x1024xf32>
    %8 = vector.broadcast %7 : vector<1x1024xf32> to vector<8x1024xf32>
    %9 = arith.addf %6, %8 : vector<8x1024xf32>
    %cst_10 = arith.constant 0.000000e+00 : f32
    %10 = vector.broadcast %cst_10 : f32 to vector<8x1024xf32>
    %11 = arith.maximumf %9, %10 : vector<8x1024xf32>
    %12 = arith.truncf %11 : vector<8x1024xf32> to vector<8x1024xbf16>
    %c0_11 = arith.constant 0 : index
    %c0_12 = arith.constant 0 : index
    %13 = vector.load %arg6[%c0_11, %c0_12] : memref<1024x512xbf16, #tpu.memory_space<vmem>>, vector<1024x512xbf16>
    %cst_13 = arith.constant dense<0.000000e+00> : vector<8x512xf32>
    %14 = tpu.matmul %12, %13, %cst_13 {dimension_numbers = #tpu.dot_dimension_numbers<[1], [0], [0], [1], [0, 0, 1, 1], [], []>} : vector<8x1024xbf16>, vector<1024x512xbf16>, vector<8x512xf32> -> vector<8x512xf32>
    %c0_14 = arith.constant 0 : index
    %c0_15 = arith.constant 0 : index
    %15 = vector.load %arg7[%c0_14, %c0_15] : memref<1x512xf32, #tpu.memory_space<vmem>>, vector<1x512xf32>
    %16 = vector.broadcast %15 : vector<1x512xf32> to vector<8x512xf32>
    %17 = arith.addf %14, %16 : vector<8x512xf32>
    %cst_16 = arith.constant 0.000000e+00 : f32
    %18 = vector.broadcast %cst_16 : f32 to vector<8x512xf32>
    %19 = arith.maximumf %17, %18 : vector<8x512xf32>
    %20 = arith.truncf %19 : vector<8x512xf32> to vector<8x512xbf16>
    %c0_17 = arith.constant 0 : index
    %c0_18 = arith.constant 0 : index
    %21 = vector.load %arg8[%c0_17, %c0_18] : memref<512x128xbf16, #tpu.memory_space<vmem>>, vector<512x128xbf16>
    %cst_19 = arith.constant dense<0.000000e+00> : vector<8x128xf32>
    %22 = tpu.matmul %20, %21, %cst_19 {dimension_numbers = #tpu.dot_dimension_numbers<[1], [0], [0], [1], [0, 0, 1, 1], [], []>} : vector<8x512xbf16>, vector<512x128xbf16>, vector<8x128xf32> -> vector<8x128xf32>
    %c0_20 = arith.constant 0 : index
    %c0_21 = arith.constant 0 : index
    %23 = vector.load %arg9[%c0_20, %c0_21] : memref<1x128xf32, #tpu.memory_space<vmem>>, vector<1x128xf32>
    %24 = vector.broadcast %23 : vector<1x128xf32> to vector<8x128xf32>
    %25 = arith.addf %22, %24 : vector<8x128xf32>
    %c0_22 = arith.constant 0 : index
    %c0_23 = arith.constant 0 : index
    %26 = vector.load %arg10[%c0_22, %c0_23] : memref<8x128xf32, #tpu.memory_space<vmem>>, vector<8x128xf32>
    tpu.vector_store %arg10[%c0_22, %c0_23], %25 {strides = array<i32>} : memref<8x128xf32, #tpu.memory_space<vmem>>, vector<8x128xf32>,
    return
  }
  func.func @transform_0(%arg0: i32) -> (i32, i32) {
    %c0_i32 = arith.constant 0 : i32
    %c0_i32_0 = arith.constant 0 : i32
    return %arg0, %c0_i32 : i32, i32
  }
  func.func @transform_1(%arg0: i32) -> (i32, i32) {
    %c0_i32 = arith.constant 0 : i32
    %c0_i32_0 = arith.constant 0 : i32
    return %arg0, %c0_i32 : i32, i32
  }
  func.func @transform_2(%arg0: i32) -> (i32, i32) {
    %c0_i32 = arith.constant 0 : i32
    %c0_i32_0 = arith.constant 0 : i32
    %c0_i32_1 = arith.constant 0 : i32
    return %c0_i32, %c0_i32_0 : i32, i32
  }
  func.func @transform_3(%arg0: i32) -> (i32, i32) {
    %c0_i32 = arith.constant 0 : i32
    %c0_i32_0 = arith.constant 0 : i32
    %c0_i32_1 = arith.constant 0 : i32
    return %c0_i32, %c0_i32_0 : i32, i32
  }
  func.func @transform_4(%arg0: i32) -> (i32, i32) {
    %c0_i32 = arith.constant 0 : i32
    %c0_i32_0 = arith.constant 0 : i32
    %c0_i32_1 = arith.constant 0 : i32
    return %c0_i32, %c0_i32_0 : i32, i32
  }
  func.func @transform_5(%arg0: i32) -> (i32, i32) {
    %c0_i32 = arith.constant 0 : i32
    %c0_i32_0 = arith.constant 0 : i32
    %c0_i32_1 = arith.constant 0 : i32
    return %c0_i32, %c0_i32_0 : i32, i32
  }
  func.func @transform_6(%arg0: i32) -> (i32, i32) {
    %c0_i32 = arith.constant 0 : i32
    %c0_i32_0 = arith.constant 0 : i32
    %c0_i32_1 = arith.constant 0 : i32
    return %c0_i32, %c0_i32_0 : i32, i32
  }
  func.func @transform_7(%arg0: i32) -> (i32, i32) {
    %c0_i32 = arith.constant 0 : i32
    %c0_i32_0 = arith.constant 0 : i32
    %c0_i32_1 = arith.constant 0 : i32
    return %c0_i32, %c0_i32_0 : i32, i32
  }
  func.func @transform_8(%arg0: i32) -> (i32, i32) {
    %c0_i32 = arith.constant 0 : i32
    %c0_i32_0 = arith.constant 0 : i32
    %c0_i32_1 = arith.constant 0 : i32
    return %c0_i32, %c0_i32_0 : i32, i32
  }
  func.func @transform_9(%arg0: i32) -> (i32, i32) {
    %c0_i32 = arith.constant 0 : i32
    %c0_i32_0 = arith.constant 0 : i32
    return %arg0, %c0_i32 : i32, i32
  }
}

</mosaic_0001>

<bundles_post_ra>
// kernel: tpu_custom_call.1
= control target key start
LH: loop header
LB: loop body
LE: loop exit
PB: predicated region body
PF: predicated region fallthrough
CT: control target
= control target key end

     0   :  { %14 = vsyncpa [#allocation3], 0  ;;  %s4863_s0 = inlined_call_operand.hbm [shape: bf16[8,128], index: 0, kind: input, shape index: {}]   ;;  %s4864_s1 = inlined_call_operand.hbm [shape: bf16[8,128], index: 1, kind: input, shape index: {}]   ;;  %s4865_s2 = inlined_call_operand.hbm [shape: bf16[128,1024], index: 2, kind: input, shape index: {}]   ;;  %s4866_s3 = inlined_call_operand.hbm [shape: bf16[128,1024], index: 3, kind: input, shape index: {}]   ;;  %s4867_s4 = inlined_call_operand.vmem [shape: f32[1,1024], index: 4, kind: input, shape index: {}]   ;;  %s4868_s5 = inlined_call_operand.hbm [shape: bf16[1024,512], index: 5, kind: input, shape index: {}]   ;;  %s4869_s6 = inlined_call_operand.vmem [shape: f32[1,512], index: 6, kind: input, shape index: {}]   ;;  %s4870_s7 = inlined_call_operand.hbm [shape: bf16[512,128], index: 7, kind: input, shape index: {}]   ;;  %s4871_s8 = inlined_call_operand.vmem [shape: f32[1,128], index: 8, kind: input, shape index: {}]   ;;  %s4872_s9 = inlined_call_operand.hbm [shape: f32[8,128], index: 9, kind: output, shape index: {}]  }
   0x1   :  { %15 = vsyncpa [#allocation6], 0 }
   0x2   :  { %16 = vsyncpa [#allocation9], 0 }
   0x3   :  { %17 = vsyncpa [#allocation12], 0 }
   0x4   :  { %18 = vsyncpa [#allocation4], 0  ;;  %s4615_s30 = smov [#allocation5]   ;;  %s4451_s13 = scalar_lea.hbm %s4864_s1, 64 }
   0x5   :  { %s35_s10 = sshll.u32 %s4615_s30, 4  ;;  %p4452_p0 = scmp.ne.s32.totalorder %s4864_s1, %s4451_s13  ;;  %s36_s10 = int_to_ptr.vmem [resolvable:$true] %s35_s10 }
   0x6   :  { %p4455_p1 = scmp.lt.u32.totalorder %s4451_s13, %s4864_s1 }
   0x8   :  { %p4457_p2 = pnand %p4455_p1, %p4452_p0 }
   0xa   :  { %4460 = shalt.err (!%p4457_p2)
}
   0xb   :  { %s4461_s18 = scalar_lea.vmem %s36_s10, 64  ;;  %p4466_p4 = scmp.lt.s32.totalorder %s36_s10, %s36_s10 }
   0xc   :  { %p4462_p3 = scmp.ne.s32.totalorder %s36_s10, %s4461_s18  ;;  %p4467_p5 = scmp.lt.s32.totalorder %s4461_s18, %s4461_s18 }
   0xe   :  { %p4468_p6 = por %p4467_p5, %p4466_p4 }
  0x10   :  { %p4469_p7 = pnand %p4468_p6, %p4462_p3 }
  0x12   :  { %4472 = shalt.err (!%p4469_p7)
}
  0x13   :  { %38 = dma.hbm_to_vmem [thread:$0]  %s4864_s1, 64, %s36_s10, [#allocation6]  }
  0x14   :  { %s4616_s21 = smov [#allocation8]   ;;  %s4617_s23 = smov [#allocation2]  }
  0x15   :  { %s56_s22 = sshll.u32 %s4616_s21, 4  ;;  %s25_s24 = sshll.u32 %s4617_s23, 4  ;;  %s57_s22 = int_to_ptr.vmem [resolvable:$true] %s56_s22  ;;  %s26_s24 = int_to_ptr.vmem [resolvable:$true] %s25_s24 }
  0x16   :  { %s4473_s27 = scalar_lea.hbm %s4866_s3, 8192 }
  0x17   :  { %p4474_p8 = scmp.ne.s32.totalorder %s4866_s3, %s4473_s27  ;;  %p4477_p9 = scmp.lt.u32.totalorder %s4473_s27, %s4866_s3 }
  0x19   :  { %p4479_p10 = pnand %p4477_p9, %p4474_p8 }
  0x1b   :  { %4482 = shalt.err (!%p4479_p10)
}
  0x1c   :  { %s4483_s1 = scalar_lea.vmem %s57_s22, 8192  ;;  %p4488_p12 = scmp.lt.s32.totalorder %s57_s22, %s57_s22 }
  0x1d   :  { %p4484_p11 = scmp.ne.s32.totalorder %s57_s22, %s4483_s1  ;;  %p4489_p13 = scmp.lt.s32.totalorder %s4483_s1, %s4483_s1 }
  0x1f   :  { %p4490_p0 = por %p4489_p13, %p4488_p12 }
  0x21   :  { %p4491_p1 = pnand %p4490_p0, %p4484_p11 }
  0x23   :  { %4494 = shalt.err (!%p4491_p1)
}
  0x24   :  { %s4618_s10 = smov 512   ;;  %s4619_s12 = smov 32  }
  0x25   :  { %62 = dma.hbm_to_vmem [thread:$0]  %s4866_s3, 8192, %s57_s22, [#allocation9], %s4618_s10, %s4618_s10, %s4619_s12  }
  0x26   :  { %s4495_s17 = scalar_lea.hbm %s4863_s0, 64 }
  0x27   :  { %p4496_p2 = scmp.ne.s32.totalorder %s4863_s0, %s4495_s17  ;;  %p4499_p3 = scmp.lt.u32.totalorder %s4495_s17, %s4863_s0 }
  0x29   :  { %p4501_p4 = pnand %p4499_p3, %p4496_p2 }
  0x2b   :  { %4504 = shalt.err (!%p4501_p4)
}
  0x2c   :  { %s4505_s23 = scalar_lea.vmem %s26_s24, 64  ;;  %p4510_p6 = scmp.lt.s32.totalorder %s26_s24, %s26_s24 }
  0x2d   :  { %p4506_p5 = scmp.ne.s32.totalorder %s26_s24, %s4505_s23  ;;  %p4511_p7 = scmp.lt.s32.totalorder %s4505_s23, %s4505_s23 }
  0x2f   :  { %p4512_p8 = por %p4511_p7, %p4510_p6 }
  0x31   :  { %p4513_p9 = pnand %p4512_p8, %p4506_p5 }
  0x33   :  { %4516 = shalt.err (!%p4513_p9)
}
  0x34   :  { %28 = dma.hbm_to_vmem [thread:$0]  %s4863_s0, 64, %s26_s24, [#allocation3]  }
  0x35   :  { %s4620_s25 = smov [#allocation7]   ;;  %s4621_s27 = smov [#allocation10]  }
  0x36   :  { %s44_s26 = sshll.u32 %s4620_s25, 4  ;;  %s70_s28 = sshll.u32 %s4621_s27, 4  ;;  %s45_s26 = int_to_ptr.vmem [resolvable:$true] %s44_s26  ;;  %s71_s28 = int_to_ptr.vmem [resolvable:$true] %s70_s28 }
  0x37   :  { %s4517_s11 = scalar_lea.hbm %s4865_s2, 8192 }
  0x38   :  { %p4518_p10 = scmp.ne.s32.totalorder %s4865_s2, %s4517_s11  ;;  %p4521_p11 = scmp.lt.u32.totalorder %s4517_s11, %s4865_s2 }
  0x3a   :  { %p4523_p12 = pnand %p4521_p11, %p4518_p10 }
  0x3c   :  { %4526 = shalt.err (!%p4523_p12)
}
  0x3d   :  { %s4527_s0 = scalar_lea.vmem %s45_s26, 8192  ;;  %p4532_p0 = scmp.lt.s32.totalorder %s45_s26, %s45_s26 }
  0x3e   :  { %p4528_p13 = scmp.ne.s32.totalorder %s45_s26, %s4527_s0  ;;  %p4533_p1 = scmp.lt.s32.totalorder %s4527_s0, %s4527_s0 }
  0x40   :  { %p4534_p2 = por %p4533_p1, %p4532_p0 }
  0x42   :  { %p4535_p3 = pnand %p4534_p2, %p4528_p13 }
  0x44   :  { %4538 = shalt.err (!%p4535_p3)
}
  0x45   :  { %50 = dma.hbm_to_vmem [thread:$0]  %s4865_s2, 8192, %s45_s26, [#allocation6], %s4618_s10, %s4618_s10, %s4619_s12  }
  0x46   :  { %s4539_s19 = scalar_lea.hbm %s4868_s5, 32768 }
  0x47   :  { %p4540_p4 = scmp.ne.s32.totalorder %s4868_s5, %s4539_s19  ;;  %p4543_p5 = scmp.lt.u32.totalorder %s4539_s19, %s4868_s5 }
  0x49   :  { %p4545_p6 = pnand %p4543_p5, %p4540_p4 }
  0x4b   :  { %4548 = shalt.err (!%p4545_p6)
}
  0x4c   :  { %s4549_s22 = scalar_lea.vmem %s71_s28, 32768  ;;  %p4554_p8 = scmp.lt.s32.totalorder %s71_s28, %s71_s28 }
  0x4d   :  { %p4550_p7 = scmp.ne.s32.totalorder %s71_s28, %s4549_s22  ;;  %p4555_p9 = scmp.lt.s32.totalorder %s4549_s22, %s4549_s22 }
  0x4f   :  { %p4556_p10 = por %p4555_p9, %p4554_p8 }
  0x51   :  { %p4557_p11 = pnand %p4556_p10, %p4550_p7 }
  0x53   :  { %4560 = shalt.err (!%p4557_p11)
}
  0x54   :  { %s4622_s2 = smov 256   ;;  %s4623_s10 = smov 16  }
  0x55   :  { %76 = dma.hbm_to_vmem [thread:$0]  %s4868_s5, 32768, %s71_s28, [#allocation9], %s4622_s2, %s4622_s2, %s4623_s10  }
  0x56   :  { %s4624_s26 = smov [#allocation11]   ;;  %s4561_s11 = scalar_lea.hbm %s4870_s7, 4096 }
  0x57   :  { %s84_s27 = sshll.u32 %s4624_s26, 4  ;;  %p4562_p12 = scmp.ne.s32.totalorder %s4870_s7, %s4561_s11  ;;  %s85_s27 = int_to_ptr.vmem [resolvable:$true] %s84_s27 }
  0x58   :  { %p4565_p13 = scmp.lt.u32.totalorder %s4561_s11, %s4870_s7 }
  0x5a   :  { %p4567_p0 = pnand %p4565_p13, %p4562_p12 }
  0x5c   :  { %4570 = shalt.err (!%p4567_p0)
}
  0x5d   :  { %s4571_s0 = scalar_lea.vmem %s85_s27, 4096  ;;  %p4576_p2 = scmp.lt.s32.totalorder %s85_s27, %s85_s27 }
  0x5e   :  { %p4572_p1 = scmp.ne.s32.totalorder %s85_s27, %s4571_s0  ;;  %p4577_p3 = scmp.lt.s32.totalorder %s4571_s0, %s4571_s0 }
  0x60   :  { %p4578_p4 = por %p4577_p3, %p4576_p2 }
  0x62   :  { %p4579_p5 = pnand %p4578_p4, %p4572_p1 }
  0x64   :  { %4582 = shalt.err (!%p4579_p5)
}
  0x65   :  { %s4625_s5 = smov 64   ;;  %s4626_s28 = smov 4  }
  0x66   :  { %90 = dma.hbm_to_vmem [thread:$0]  %s4870_s7, 4096, %s85_s27, [#allocation12], %s4625_s5, %s4625_s5, %s4626_s28  }
  0x67   :  { %4605 = dma.done.wait [#allocation3], 64  }
  0x68   :  { %4606 = vsyncadd [#allocation3], 4294967232 }
  0x69   :  { %4607 = dma.done.wait [#allocation6], 8256  }
  0x6a   :  { %4608 = vsyncadd [#allocation6], 4294959040 }
  0x6b   :  { %4609 = dma.done.wait [#allocation9], 40960  }
  0x6c   :  { %4610 = vsyncadd [#allocation9], 4294926336 }
  0x6d   :  { %4611 = dma.done.wait [#allocation12], 4096  }
  0x6e   :  { %4612 = vsyncadd [#allocation12], 4294963200  ;;  %v4627_v0 = vmov 0   ;;  %v178_v1 = vld [vmem:[#allocation8] sm:$0xff]  ;;  %v179_v3 = vld [vmem:[#allocation8 + $0x8] sm:$0xff]  ;;  %s4628_s20 = smov [#allocation13]  }
  0x6f   :  { %594 = vmatprep.mubr.bf16.mxu0 %v4627_v0  ;;  %635 = vmatprep.mubr.bf16.mxu1 %v4627_v0  ;;  %v182_v2 = vld [vmem:[#allocation8 + $0x20] sm:$0xff]  ;;  %v183_v5 = vld [vmem:[#allocation8 + $0x28] sm:$0xff]  ;;  %v180_v63 = vld [vmem:[#allocation8 + $0x10] sm:$0xff]  ;;  %s3520_s21 = sshll.u32 %s4628_s20, 4  ;;  %s3521_s21 = int_to_ptr.vmem [resolvable:$true] %s3520_s21 }
  0x70   :  { %v3533_v4 = vcombine.high %v178_v1, %v182_v2  ;;  %v3532_v6 = vcombine.low %v178_v1, %v182_v2  ;;  %v186_v7 = vld [vmem:[#allocation8 + $0x40] sm:$0xff]  ;;  %v3535_v9 = vcombine.high %v179_v3, %v183_v5  ;;  %v3534_v10 = vcombine.low %v179_v3, %v183_v5  ;;  %v187_v12 = vld [vmem:[#allocation8 + $0x48] sm:$0xff]  ;;  %v184_v1 = vld [vmem:[#allocation8 + $0x30] sm:$0xff]  ;;  %s4583_s23 = scalar_lea.vmem %s3521_s21, 128  ;;  %p4588_p7 = scmp.lt.s32.totalorder %s3521_s21, %s3521_s21 }
  0x71   :  { %v190_v8 = vld [vmem:[#allocation8 + $0x60] sm:$0xff]  ;;  %v191_v13 = vld [vmem:[#allocation8 + $0x68] sm:$0xff]  ;;  %v181_v2 = vld [vmem:[#allocation8 + $0x18] sm:$0xff]  ;;  %p4584_p6 = scmp.ne.s32.totalorder %s3521_s21, %s4583_s23  ;;  %p4589_p8 = scmp.lt.s32.totalorder %s4583_s23, %s4583_s23 }
  0x72   :  { %v3541_v11 = vcombine.high %v186_v7, %v190_v8  ;;  %v194_v14 = vld [vmem:[#allocation8 + $0x80] sm:$0xff]  ;;  %562 = vmatprep.subr.bf16.mxu0 %v3533_v4  ;;  %v3543_v15 = vcombine.high %v187_v12, %v191_v13  ;;  %v195_v17 = vld [vmem:[#allocation8 + $0x88] sm:$0xff]  ;;  %603 = vmatprep.subr.bf16.mxu1 %v3535_v9  ;;  %v3540_v19 = vcombine.low %v186_v7, %v190_v8  ;;  %v185_v3 = vld [vmem:[#allocation8 + $0x38] sm:$0xff] }
  0x73   :  { %v198_v16 = vld [vmem:[#allocation8 + $0xa0] sm:$0xff]  ;;  %v199_v18 = vld [vmem:[#allocation8 + $0xa8] sm:$0xff]  ;;  %563 = vmatpush1.bf16.msra.mxu0 %v3532_v6  ;;  %604 = vmatpush1.bf16.msra.mxu1 %v3534_v10  ;;  %v3542_v20 = vcombine.low %v187_v12, %v191_v13  ;;  %v3537_v6 = vcombine.high %v180_v63, %v184_v1  ;;  %v3539_v7 = vcombine.high %v181_v2, %v185_v3  ;;  %v188_v8 = vld [vmem:[#allocation8 + $0x50] sm:$0xff]  ;;  %p4590_p9 = por %p4589_p8, %p4588_p7 }
  0x74   :  { %564 = vmatprep.subr.bf16.mxu0 %v3541_v11  ;;  %v3549_v21 = vcombine.high %v194_v14, %v198_v16  ;;  %605 = vmatprep.subr.bf16.mxu1 %v3543_v15  ;;  %v3551_v22 = vcombine.high %v195_v17, %v199_v18  ;;  %v202_v23 = vld [vmem:[#allocation8 + $0xc0] sm:$0xff]  ;;  %v203_v25 = vld [vmem:[#allocation8 + $0xc8] sm:$0xff]  ;;  %v3548_v27 = vcombine.low %v194_v14, %v198_v16  ;;  %v192_v9 = vld [vmem:[#allocation8 + $0x70] sm:$0xff] }
  0x75   :  { %v206_v24 = vld [vmem:[#allocation8 + $0xe0] sm:$0xff]  ;;  %v207_v26 = vld [vmem:[#allocation8 + $0xe8] sm:$0xff]  ;;  %v3550_v28 = vcombine.low %v195_v17, %v199_v18  ;;  %v189_v10 = vld [vmem:[#allocation8 + $0x58] sm:$0xff]  ;;  %v3536_v13 = vcombine.low %v180_v63, %v184_v1  ;;  %v3538_v14 = vcombine.low %v181_v2, %v185_v3  ;;  %v3545_v15 = vcombine.high %v188_v8, %v192_v9  ;;  %p4591_p10 = pnand %p4590_p9, %p4584_p6 }
  0x76   :  { %v3557_v29 = vcombine.high %v202_v23, %v206_v24  ;;  %v3559_v30 = vcombine.high %v203_v25, %v207_v26  ;;  %v210_v31 = vld [vmem:[#allocation8 + $0x100] sm:$0xff]  ;;  %v211_v33 = vld [vmem:[#allocation8 + $0x108] sm:$0xff]  ;;  %v3556_v35 = vcombine.low %v202_v23, %v206_v24  ;;  %v3558_v36 = vcombine.low %v203_v25, %v207_v26  ;;  %v193_v11 = vld [vmem:[#allocation8 + $0x78] sm:$0xff] }
  0x77   :  { %565 = vmatpush1.bf16.msra.mxu0 %v3540_v19  ;;  %606 = vmatpush1.bf16.msra.mxu1 %v3542_v20  ;;  %v214_v32 = vld [vmem:[#allocation8 + $0x120] sm:$0xff]  ;;  %v215_v34 = vld [vmem:[#allocation8 + $0x128] sm:$0xff]  ;;  %v4759_v12 = vld [vmem:[#allocation5] sm:$0xf]  ;;  %v3547_v16 = vcombine.high %v189_v10, %v193_v11 }
  0x78   :  { %566 = vmatprep.subr.bf16.mxu0 %v3549_v21  ;;  %607 = vmatprep.subr.bf16.mxu1 %v3551_v22  ;;  %v3565_v37 = vcombine.high %v210_v31, %v214_v32  ;;  %v3567_v38 = vcombine.high %v211_v33, %v215_v34  ;;  %v218_v39 = vld [vmem:[#allocation8 + $0x140] sm:$0xff]  ;;  %v219_v41 = vld [vmem:[#allocation8 + $0x148] sm:$0xff]  ;;  %v3564_v43 = vcombine.low %v210_v31, %v214_v32  ;;  %v196_v17 = vld [vmem:[#allocation8 + $0x90] sm:$0xff] }
  0x79   :  { %v222_v40 = vld [vmem:[#allocation8 + $0x160] sm:$0xff]  ;;  %v223_v42 = vld [vmem:[#allocation8 + $0x168] sm:$0xff]  ;;  %v3566_v44 = vcombine.low %v211_v33, %v215_v34  ;;  %v200_v18 = vld [vmem:[#allocation8 + $0xb0] sm:$0xff]  ;;  %v3544_v21 = vcombine.low %v188_v8, %v192_v9  ;;  %v3546_v22 = vcombine.low %v189_v10, %v193_v11 }
  0x7a   :  { %v3573_v45 = vcombine.high %v218_v39, %v222_v40  ;;  %v3575_v46 = vcombine.high %v219_v41, %v223_v42  ;;  %v226_v47 = vld [vmem:[#allocation8 + $0x180] sm:$0xff]  ;;  %v227_v49 = vld [vmem:[#allocation8 + $0x188] sm:$0xff]  ;;  %v3572_v51 = vcombine.low %v218_v39, %v222_v40  ;;  %v3574_v52 = vcombine.low %v219_v41, %v223_v42  ;;  %v197_v19 = vld [vmem:[#allocation8 + $0x98] sm:$0xff] }
  0x7b   :  { %567 = vmatpush1.bf16.msra.mxu0 %v3548_v27  ;;  %608 = vmatpush1.bf16.msra.mxu1 %v3550_v28  ;;  %v230_v48 = vld [vmem:[#allocation8 + $0x1a0] sm:$0xff]  ;;  %v231_v50 = vld [vmem:[#allocation8 + $0x1a8] sm:$0xff]  ;;  %v201_v20 = vld [vmem:[#allocation8 + $0xb8] sm:$0xff]  ;;  %v3553_v23 = vcombine.high %v196_v17, %v200_v18 }
  0x7c   :  { %568 = vmatprep.subr.bf16.mxu0 %v3557_v29  ;;  %609 = vmatprep.subr.bf16.mxu1 %v3559_v30  ;;  %v3581_v53 = vcombine.high %v226_v47, %v230_v48  ;;  %v3583_v54 = vcombine.high %v227_v49, %v231_v50  ;;  %v234_v55 = vld [vmem:[#allocation8 + $0x1c0] sm:$0xff]  ;;  %v235_v57 = vld [vmem:[#allocation8 + $0x1c8] sm:$0xff]  ;;  %v3580_v59 = vcombine.low %v226_v47, %v230_v48  ;;  %v204_v25 = vld [vmem:[#allocation8 + $0xd0] sm:$0xff] }
  0x7d   :  { %v238_v56 = vld [vmem:[#allocation8 + $0x1e0] sm:$0xff]  ;;  %v239_v58 = vld [vmem:[#allocation8 + $0x1e8] sm:$0xff]  ;;  %v3582_v60 = vcombine.low %v227_v49, %v231_v50  ;;  %v3555_v24 = vcombine.high %v197_v19, %v201_v20  ;;  %v208_v26 = vld [vmem:[#allocation8 + $0xf0] sm:$0xff]  ;;  %v3552_v29 = vcombine.low %v196_v17, %v200_v18  ;;  %v3554_v30 = vcombine.low %v197_v19, %v201_v20 }
  0x7e   :  { %v3589_v61 = vcombine.high %v234_v55, %v238_v56  ;;  %v3591_v62 = vcombine.high %v235_v57, %v239_v58  ;;  %v3588_v4 = vcombine.low %v234_v55, %v238_v56  ;;  %v3590_v5 = vcombine.low %v235_v57, %v239_v58  ;;  %v205_v27 = vld [vmem:[#allocation8 + $0xd8] sm:$0xff]  ;;  %v212_v33 = vld [vmem:[#allocation8 + $0x110] sm:$0xff]  ;;  %v117_v63 = vld [vmem:[#allocation7 + $0x20] sm:$0xff] }
  0x7f   :  { %569 = vmatpush1.bf16.msra.mxu0 %v3556_v35  ;;  %610 = vmatpush1.bf16.msra.mxu1 %v3558_v36  ;;  %v209_v28 = vld [vmem:[#allocation8 + $0xf8] sm:$0xff]  ;;  %v3561_v31 = vcombine.high %v204_v25, %v208_v26  ;;  %v216_v34 = vld [vmem:[#allocation8 + $0x130] sm:$0xff]  ;;  %v114_v3 = vld [vmem:[#allocation7 + $0x8] sm:$0xff] }
  0x80   :  { %570 = vmatprep.subr.bf16.mxu0 %v3565_v37  ;;  %611 = vmatprep.subr.bf16.mxu1 %v3567_v38  ;;  %v3563_v32 = vcombine.high %v205_v27, %v209_v28  ;;  %v213_v35 = vld [vmem:[#allocation8 + $0x118] sm:$0xff]  ;;  %v3560_v37 = vcombine.low %v204_v25, %v208_v26  ;;  %v220_v38 = vld [vmem:[#allocation8 + $0x150] sm:$0xff]  ;;  %v3562_v40 = vcombine.low %v205_v27, %v209_v28  ;;  %v125_v8 = vld [vmem:[#allocation7 + $0x60] sm:$0xff] }
  0x81   :  { %v217_v36 = vld [vmem:[#allocation8 + $0x138] sm:$0xff]  ;;  %v224_v39 = vld [vmem:[#allocation8 + $0x170] sm:$0xff]  ;;  %v3569_v41 = vcombine.high %v212_v33, %v216_v34  ;;  %v122_v11 = vld [vmem:[#allocation7 + $0x48] sm:$0xff] }
  0x82   :  { %v221_v42 = vld [vmem:[#allocation8 + $0x158] sm:$0xff]  ;;  %v232_v47 = vld [vmem:[#allocation8 + $0x1b0] sm:$0xff]  ;;  %v3570_v48 = vcombine.low %v213_v35, %v217_v36  ;;  %v3577_v49 = vcombine.high %v220_v38, %v224_v39  ;;  %v133_v17 = vld [vmem:[#allocation7 + $0xa0] sm:$0xff] }
  0x83   :  { %571 = vmatpush1.bf16.msra.mxu0 %v3564_v43  ;;  %612 = vmatpush1.bf16.msra.mxu1 %v3566_v44  ;;  %v225_v43 = vld [vmem:[#allocation8 + $0x178] sm:$0xff]  ;;  %v3571_v44 = vcombine.high %v213_v35, %v217_v36  ;;  %v240_v55 = vld [vmem:[#allocation8 + $0x1f0] sm:$0xff]  ;;  %v130_v20 = vld [vmem:[#allocation7 + $0x88] sm:$0xff] }
  0x84   :  { %572 = vmatprep.subr.bf16.mxu0 %v3573_v45  ;;  %613 = vmatprep.subr.bf16.mxu1 %v3575_v46  ;;  %v3568_v45 = vcombine.low %v212_v33, %v216_v34  ;;  %v228_v46 = vld [vmem:[#allocation8 + $0x190] sm:$0xff]  ;;  %v229_v50 = vld [vmem:[#allocation8 + $0x198] sm:$0xff]  ;;  %v3578_v56 = vcombine.low %v221_v42, %v225_v43  ;;  %v141_v25 = vld [vmem:[#allocation7 + $0xe0] sm:$0xff] }
  0x85   :  { %v3585_v57 = vcombine.high %v228_v46, %v232_v47  ;;  %v237_v58 = vld [vmem:[#allocation8 + $0x1d8] sm:$0xff]  ;;  %v138_v28 = vld [vmem:[#allocation7 + $0xc8] sm:$0xff] }
  0x86   :  { %v146_v35 = vld [vmem:[#allocation7 + $0x108] sm:$0xff] }
  0x87   :  { %573 = vmatpush1.bf16.msra.mxu0 %v3572_v51  ;;  %614 = vmatpush1.bf16.msra.mxu1 %v3574_v52  ;;  %v233_v51 = vld [vmem:[#allocation8 + $0x1b8] sm:$0xff]  ;;  %v3579_v52 = vcombine.high %v221_v42, %v225_v43  ;;  %v150_v36 = vld [vmem:[#allocation7 + $0x128] sm:$0xff] }
  0x88   :  { %574 = vmatprep.subr.bf16.mxu0 %v3581_v53  ;;  %615 = vmatprep.subr.bf16.mxu1 %v3583_v54  ;;  %v3576_v53 = vcombine.low %v220_v38, %v224_v39  ;;  %v236_v54 = vld [vmem:[#allocation8 + $0x1d0] sm:$0xff]  ;;  %v3586_v1 = vcombine.low %v229_v50, %v233_v51  ;;  %v153_v39 = vld [vmem:[#allocation7 + $0x140] sm:$0xff]  ;;  %v154_v43 = vld [vmem:[#allocation7 + $0x148] sm:$0xff] }
  0x89   :  { %v3593_v2 = vcombine.high %v236_v54, %v240_v55 }
  0x8b   :  { %575 = vmatpush1.bf16.msra.mxu0 %v3580_v59  ;;  %616 = vmatpush1.bf16.msra.mxu1 %v3582_v60  ;;  %v241_v59 = vld [vmem:[#allocation8 + $0x1f8] sm:$0xff]  ;;  %v3587_v60 = vcombine.high %v229_v50, %v233_v51  ;;  %v162_v51 = vld [vmem:[#allocation7 + $0x188] sm:$0xff] }
  0x8c   :  { %576 = vmatprep.subr.bf16.mxu0 %v3589_v61  ;;  %617 = vmatprep.subr.bf16.mxu1 %v3591_v62  ;;  %v3584_v61 = vcombine.low %v228_v46, %v232_v47  ;;  %v113_v62 = vld [vmem:[#allocation7] sm:$0xff]  ;;  %v3594_v9 = vcombine.low %v237_v58, %v241_v59 }
  0x8d   :  { %v3597_v10 = vcombine.high %v113_v62, %v117_v63  ;;  %v161_v47 = vld [vmem:[#allocation7 + $0x180] sm:$0xff] }
  0x8f   :  { %577 = vmatpush1.bf16.msra.mxu0 %v3588_v4  ;;  %618 = vmatpush1.bf16.msra.mxu1 %v3590_v5  ;;  %v118_v4 = vld [vmem:[#allocation7 + $0x28] sm:$0xff]  ;;  %v3595_v5 = vcombine.high %v237_v58, %v241_v59 }
  0x90   :  { %644 = vmatprep.subr.bf16.mxu0 %v3537_v6  ;;  %685 = vmatprep.subr.bf16.mxu1 %v3539_v7  ;;  %v3592_v6 = vcombine.low %v236_v54, %v240_v55  ;;  %v121_v7 = vld [vmem:[#allocation7 + $0x40] sm:$0xff]  ;;  %v3598_v18 = vcombine.low %v114_v3, %v118_v4  ;;  %v170_v59 = vld [vmem:[#allocation7 + $0x1c8] sm:$0xff] }
  0x91   :  { %v3605_v19 = vcombine.high %v121_v7, %v125_v8  ;;  %v169_v55 = vld [vmem:[#allocation7 + $0x1c0] sm:$0xff] }
  0x92   :  { %595 = vmatmul.mubr.bf16.vlgmr.msra.gmra.mrb[0].mxu0 %v4759_v12  ;;  %636 = vmatmul.mubr.bf16.vlgmr.msra.gmra.mrb[0].mxu1 %v4759_v12 }
  0x93   :  { %645 = vmatpush1.bf16.msra.mxu0 %v3536_v13  ;;  %686 = vmatpush1.bf16.msra.mxu1 %v3538_v14  ;;  %v126_v13 = vld [vmem:[#allocation7 + $0x68] sm:$0xff]  ;;  %v3599_v14 = vcombine.high %v114_v3, %v118_v4  ;;  %v116_v4 = vld [vmem:[#allocation7 + $0x18] sm:$0xff] }
  0x94   :  { %646 = vmatprep.subr.bf16.mxu0 %v3545_v15  ;;  %687 = vmatprep.subr.bf16.mxu1 %v3547_v16  ;;  %v3596_v15 = vcombine.low %v113_v62, %v117_v63  ;;  %v129_v16 = vld [vmem:[#allocation7 + $0x80] sm:$0xff]  ;;  %v3606_v26 = vcombine.low %v122_v11, %v126_v13  ;;  %v115_v63 = vld [vmem:[#allocation7 + $0x10] sm:$0xff] }
  0x95   :  { %676 = vmatprep.mubr.bf16.mxu0 %v4627_v0  ;;  %717 = vmatprep.mubr.bf16.mxu1 %v4627_v0  ;;  %v3613_v27 = vcombine.high %v129_v16, %v133_v17 }
  0x97   :  { %647 = vmatpush1.bf16.msra.mxu0 %v3544_v21  ;;  %688 = vmatpush1.bf16.msra.mxu1 %v3546_v22  ;;  %v134_v21 = vld [vmem:[#allocation7 + $0xa8] sm:$0xff]  ;;  %v3607_v22 = vcombine.high %v122_v11, %v126_v13  ;;  %v124_v13 = vld [vmem:[#allocation7 + $0x58] sm:$0xff] }
  0x98   :  { %648 = vmatprep.subr.bf16.mxu0 %v3553_v23  ;;  %689 = vmatprep.subr.bf16.mxu1 %v3555_v24  ;;  %v3604_v23 = vcombine.low %v121_v7, %v125_v8  ;;  %v137_v24 = vld [vmem:[#allocation7 + $0xc0] sm:$0xff]  ;;  %v3614_v33 = vcombine.low %v130_v20, %v134_v21  ;;  %v123_v8 = vld [vmem:[#allocation7 + $0x50] sm:$0xff] }
  0x99   :  { %v3621_v34 = vcombine.high %v137_v24, %v141_v25  ;;  %v3620_v38 = vcombine.low %v137_v24, %v141_v25 }
  0x9b   :  { %649 = vmatpush1.bf16.msra.mxu0 %v3552_v29  ;;  %690 = vmatpush1.bf16.msra.mxu1 %v3554_v30  ;;  %v142_v29 = vld [vmem:[#allocation7 + $0xe8] sm:$0xff]  ;;  %v3615_v30 = vcombine.high %v130_v20, %v134_v21 }
  0x9c   :  { %650 = vmatprep.subr.bf16.mxu0 %v3561_v31  ;;  %691 = vmatprep.subr.bf16.mxu1 %v3563_v32  ;;  %v3612_v31 = vcombine.low %v129_v16, %v133_v17  ;;  %v145_v32 = vld [vmem:[#allocation7 + $0x100] sm:$0xff] }
  0x9f   :  { %651 = vmatpush1.bf16.msra.mxu0 %v3560_v37  ;;  %692 = vmatpush1.bf16.msra.mxu1 %v3562_v40  ;;  %v3623_v37 = vcombine.high %v138_v28, %v142_v29  ;;  %v157_v40 = vld [vmem:[#allocation7 + $0x160] sm:$0xff] }
  0xa0   :  { %652 = vmatprep.subr.bf16.mxu0 %v3569_v41  ;;  %693 = vmatprep.subr.bf16.mxu1 %v3571_v44  ;;  %v3622_v41 = vcombine.low %v138_v28, %v142_v29  ;;  %v158_v44 = vld [vmem:[#allocation7 + $0x168] sm:$0xff]  ;;  %v3637_v50 = vcombine.high %v153_v39, %v157_v40  ;;  %v3636_v54 = vcombine.low %v153_v39, %v157_v40 }
  0xa3   :  { %653 = vmatpush1.bf16.msra.mxu0 %v3568_v45  ;;  %694 = vmatpush1.bf16.msra.mxu1 %v3570_v48  ;;  %v3631_v45 = vcombine.high %v146_v35, %v150_v36  ;;  %v165_v48 = vld [vmem:[#allocation7 + $0x1a0] sm:$0xff] }
  0xa4   :  { %654 = vmatprep.subr.bf16.mxu0 %v3577_v49  ;;  %695 = vmatprep.subr.bf16.mxu1 %v3579_v52  ;;  %v3630_v49 = vcombine.low %v146_v35, %v150_v36  ;;  %v166_v52 = vld [vmem:[#allocation7 + $0x1a8] sm:$0xff]  ;;  %v3645_v58 = vcombine.high %v161_v47, %v165_v48  ;;  %v3644_v62 = vcombine.low %v161_v47, %v165_v48  ;;  %v163_v48 = vld [vmem:[#allocation7 + $0x190] sm:$0xff] }
  0xa7   :  { %655 = vmatpush1.bf16.msra.mxu0 %v3576_v53  ;;  %696 = vmatpush1.bf16.msra.mxu1 %v3578_v56  ;;  %v3639_v53 = vcombine.high %v154_v43, %v158_v44  ;;  %v173_v56 = vld [vmem:[#allocation7 + $0x1e0] sm:$0xff] }
  0xa8   :  { %656 = vmatprep.subr.bf16.mxu0 %v3585_v57  ;;  %697 = vmatprep.subr.bf16.mxu1 %v3587_v60  ;;  %v3638_v57 = vcombine.low %v154_v43, %v158_v44  ;;  %v174_v60 = vld [vmem:[#allocation7 + $0x1e8] sm:$0xff]  ;;  %v3653_v3 = vcombine.high %v169_v55, %v173_v56  ;;  %v3652_v7 = vcombine.low %v169_v55, %v173_v56  ;;  %v156_v44 = vld [vmem:[#allocation7 + $0x158] sm:$0xff]  ;;  %v171_v56 = vld [vmem:[#allocation7 + $0x1d0] sm:$0xff] }
  0xab   :  { %657 = vmatpush1.bf16.msra.mxu0 %v3584_v61  ;;  %698 = vmatpush1.bf16.msra.mxu1 %v3586_v1  ;;  %v3647_v61 = vcombine.high %v162_v51, %v166_v52  ;;  %v119_v1 = vld [vmem:[#allocation7 + $0x30] sm:$0xff] }
  0xac   :  { %658 = vmatprep.subr.bf16.mxu0 %v3593_v2  ;;  %699 = vmatprep.subr.bf16.mxu1 %v3595_v5  ;;  %v3646_v2 = vcombine.low %v162_v51, %v166_v52  ;;  %v120_v5 = vld [vmem:[#allocation7 + $0x38] sm:$0xff]  ;;  %v3601_v11 = vcombine.high %v115_v63, %v119_v1  ;;  %v3600_v17 = vcombine.low %v115_v63, %v119_v1 }
  0xad   :  { %v3603_v16 = vcombine.high %v116_v4, %v120_v5  ;;  %v3602_v20 = vcombine.low %v116_v4, %v120_v5  ;;  %v164_v52 = vld [vmem:[#allocation7 + $0x198] sm:$0xff] }
  0xaf   :  { %659 = vmatpush1.bf16.msra.mxu0 %v3592_v6  ;;  %700 = vmatpush1.bf16.msra.mxu1 %v3594_v9  ;;  %v3655_v6 = vcombine.high %v170_v59, %v174_v60  ;;  %v127_v9 = vld [vmem:[#allocation7 + $0x70] sm:$0xff] }
  0xb0   :  { %1046 = vmatprep.subr.bf16.mxu0 %v3597_v10  ;;  %1087 = vmatprep.subr.bf16.mxu1 %v3599_v14  ;;  %v3654_v10 = vcombine.low %v170_v59, %v174_v60  ;;  %v128_v14 = vld [vmem:[#allocation7 + $0x78] sm:$0xff]  ;;  %v3609_v21 = vcombine.high %v123_v8, %v127_v9  ;;  %v3608_v25 = vcombine.low %v123_v8, %v127_v9  ;;  %v4035_v8 = vld [vmem:[#allocation10] ss:$16 sps:$4 sm:$0xff]  }
  0xb1   :  { %v3611_v24 = vcombine.high %v124_v13, %v128_v14  ;;  %v3610_v28 = vcombine.low %v124_v13, %v128_v14  ;;  %v172_v60 = vld [vmem:[#allocation7 + $0x1d8] sm:$0xff]  ;;  %v4041_v13 = vld [vmem:[#allocation10 + $0x20] ss:$16 sps:$4 sm:$0xff]  }
  0xb2   :  { %677 = vmatmul.mubr.bf16.vlgmr.msra.gmra.mrb[4].mxu0 %v4759_v12  ;;  %718 = vmatmul.mubr.bf16.vlgmr.msra.gmra.mrb[4].mxu1 %v4759_v12  ;;  %v149_v12 = vld [vmem:[#allocation7 + $0x120] sm:$0xff]  ;;  %v4038_v9 = vld [vmem:[#allocation10 + $0x8] ss:$16 sps:$4 sm:$0xff]  }
  0xb3   :  { %1047 = vmatpush1.bf16.msra.mxu0 %v3596_v15  ;;  %1088 = vmatpush1.bf16.msra.mxu1 %v3598_v18  ;;  %v3629_v42 = vcombine.high %v145_v32, %v149_v12  ;;  %v3628_v46 = vcombine.low %v145_v32, %v149_v12  ;;  %v4769_v15 = vld [vmem:[#allocation2] sm:$0xf]  ;;  %v131_v18 = vld [vmem:[#allocation7 + $0x90] sm:$0xff] }
  0xb4   :  { %1048 = vmatprep.subr.bf16.mxu0 %v3605_v19  ;;  %1089 = vmatprep.subr.bf16.mxu1 %v3607_v22  ;;  %v135_v19 = vld [vmem:[#allocation7 + $0xb0] sm:$0xff]  ;;  %v132_v22 = vld [vmem:[#allocation7 + $0x98] sm:$0xff] }
  0xb5   :  { %1078 = vmatprep.mubr.bf16.mxu0 %v4627_v0  ;;  %1119 = vmatprep.mubr.bf16.mxu1 %v4627_v0  ;;  %v3617_v29 = vcombine.high %v131_v18, %v135_v19  ;;  %v3616_v12 = vcombine.low %v131_v18, %v135_v19  ;;  %v4044_v14 = vld [vmem:[#allocation10 + $0x28] ss:$16 sps:$4 sm:$0xff]   ;;  %v4047_v18 = vld [vmem:[#allocation10 + $0x40] ss:$16 sps:$4 sm:$0xff]  }
  0xb6   :  { %v4050_v19 = vld [vmem:[#allocation10 + $0x48] ss:$16 sps:$4 sm:$0xff]  }
  0xb7   :  { %1049 = vmatpush1.bf16.msra.mxu0 %v3604_v23  ;;  %1090 = vmatpush1.bf16.msra.mxu1 %v3606_v26  ;;  %v136_v23 = vld [vmem:[#allocation7 + $0xb8] sm:$0xff]  ;;  %v139_v26 = vld [vmem:[#allocation7 + $0xd0] sm:$0xff] }
  0xb8   :  { %1050 = vmatprep.subr.bf16.mxu0 %v3613_v27  ;;  %1091 = vmatprep.subr.bf16.mxu1 %v3615_v30  ;;  %v143_v27 = vld [vmem:[#allocation7 + $0xf0] sm:$0xff]  ;;  %v140_v30 = vld [vmem:[#allocation7 + $0xd8] sm:$0xff]  ;;  %v3619_v32 = vcombine.high %v132_v22, %v136_v23  ;;  %v3618_v35 = vcombine.low %v132_v22, %v136_v23 }
  0xb9   :  { %v3625_v36 = vcombine.high %v139_v26, %v143_v27  ;;  %v3624_v40 = vcombine.low %v139_v26, %v143_v27  ;;  %v4053_v22 = vld [vmem:[#allocation10 + $0x60] ss:$16 sps:$4 sm:$0xff]   ;;  %v4056_v23 = vld [vmem:[#allocation10 + $0x68] ss:$16 sps:$4 sm:$0xff]   ;;  %v4067_v27 = vld [vmem:[#allocation10 + $0xa4] ss:$16 sps:$4 sm:$0xff]  }
  0xba   :  { %v4062_v26 = vld [vmem:[#allocation10 + $0x88] ss:$16 sps:$4 sm:$0xff]  }
  0xbb   :  { %1051 = vmatpush1.bf16.msra.mxu0 %v3612_v31  ;;  %1092 = vmatpush1.bf16.msra.mxu1 %v3614_v33  ;;  %v144_v31 = vld [vmem:[#allocation7 + $0xf8] sm:$0xff]  ;;  %v147_v33 = vld [vmem:[#allocation7 + $0x110] sm:$0xff] }
  0xbc   :  { %1052 = vmatprep.subr.bf16.mxu0 %v3621_v34  ;;  %1093 = vmatprep.subr.bf16.mxu1 %v3623_v37  ;;  %v151_v34 = vld [vmem:[#allocation7 + $0x130] sm:$0xff]  ;;  %v148_v37 = vld [vmem:[#allocation7 + $0x118] sm:$0xff]  ;;  %v3627_v39 = vcombine.high %v140_v30, %v144_v31  ;;  %v3626_v43 = vcombine.low %v140_v30, %v144_v31 }
  0xbd   :  { %v3632_v47 = vcombine.low %v147_v33, %v151_v34  ;;  %v4068_v30 = vld [vmem:[#allocation10 + $0xa8] ss:$16 sps:$4 sm:$0xff]   ;;  %v4073_v31 = vld [vmem:[#allocation10 + $0xc4] ss:$16 sps:$4 sm:$0xff]  }
  0xbf   :  { %1053 = vmatpush1.bf16.msra.mxu0 %v3620_v38  ;;  %1094 = vmatpush1.bf16.msra.mxu1 %v3622_v41  ;;  %v152_v38 = vld [vmem:[#allocation7 + $0x138] sm:$0xff]  ;;  %v155_v41 = vld [vmem:[#allocation7 + $0x150] sm:$0xff] }
  0xc0   :  { %1054 = vmatprep.subr.bf16.mxu0 %v3629_v42  ;;  %1095 = vmatprep.subr.bf16.mxu1 %v3631_v45  ;;  %v159_v42 = vld [vmem:[#allocation7 + $0x170] sm:$0xff]  ;;  %v160_v45 = vld [vmem:[#allocation7 + $0x178] sm:$0xff] }
  0xc1   :  { %v3641_v51 = vcombine.high %v155_v41, %v159_v42  ;;  %v3640_v55 = vcombine.low %v155_v41, %v159_v42  ;;  %v4086_v41 = vld [vmem:[#allocation10 + $0x108] ss:$16 sps:$4 sm:$0xff]   ;;  %v4091_v42 = vld [vmem:[#allocation10 + $0x124] ss:$16 sps:$4 sm:$0xff]  }
  0xc3   :  { %1055 = vmatpush1.bf16.msra.mxu0 %v3628_v46  ;;  %1096 = vmatpush1.bf16.msra.mxu1 %v3630_v49  ;;  %v3635_v46 = vcombine.high %v148_v37, %v152_v38  ;;  %v167_v49 = vld [vmem:[#allocation7 + $0x1b0] sm:$0xff] }
  0xc4   :  { %1056 = vmatprep.subr.bf16.mxu0 %v3637_v50  ;;  %1097 = vmatprep.subr.bf16.mxu1 %v3639_v53  ;;  %v3634_v50 = vcombine.low %v148_v37, %v152_v38  ;;  %v168_v53 = vld [vmem:[#allocation7 + $0x1b8] sm:$0xff]  ;;  %v3649_v59 = vcombine.high %v163_v48, %v167_v49  ;;  %v3648_v63 = vcombine.low %v163_v48, %v167_v49  ;;  %v4085_v38 = vld [vmem:[#allocation10 + $0x104] ss:$16 sps:$4 sm:$0xff]  }
  0xc5   :  { %v3650_v1 = vcombine.low %v164_v52, %v168_v53  ;;  %v4080_v37 = vld [vmem:[#allocation10 + $0xe8] ss:$16 sps:$4 sm:$0xff]   ;;  %v4103_v49 = vld [vmem:[#allocation10 + $0x164] ss:$16 sps:$4 sm:$0xff]  }
  0xc6   :  { %v4098_v48 = vld [vmem:[#allocation10 + $0x148] ss:$16 sps:$4 sm:$0xff]  }
  0xc7   :  { %1057 = vmatpush1.bf16.msra.mxu0 %v3636_v54  ;;  %1098 = vmatpush1.bf16.msra.mxu1 %v3638_v57  ;;  %v3643_v54 = vcombine.high %v156_v44, %v160_v45  ;;  %v175_v57 = vld [vmem:[#allocation7 + $0x1f0] sm:$0xff] }
  0xc8   :  { %1058 = vmatprep.subr.bf16.mxu0 %v3645_v58  ;;  %1099 = vmatprep.subr.bf16.mxu1 %v3647_v61  ;;  %v3642_v58 = vcombine.low %v156_v44, %v160_v45  ;;  %v176_v61 = vld [vmem:[#allocation7 + $0x1f8] sm:$0xff]  ;;  %v3656_v4 = vcombine.low %v171_v56, %v175_v57  ;;  %v4097_v45 = vld [vmem:[#allocation10 + $0x144] ss:$16 sps:$4 sm:$0xff]  }
  0xc9   :  { %v3658_v5 = vcombine.low %v172_v60, %v176_v61  ;;  %v4092_v44 = vld [vmem:[#allocation10 + $0x128] ss:$16 sps:$4 sm:$0xff]  }
  0xcb   :  { %1059 = vmatpush1.bf16.msra.mxu0 %v3644_v62  ;;  %1100 = vmatpush1.bf16.msra.mxu1 %v3646_v2  ;;  %v3651_v62 = vcombine.high %v164_v52, %v168_v53  ;;  %v3657_v2 = vcombine.high %v171_v56, %v175_v57  ;;  %v4104_v52 = vld [vmem:[#allocation10 + $0x168] ss:$16 sps:$4 sm:$0xff]   ;;  %v4109_v53 = vld [vmem:[#allocation10 + $0x184] ss:$16 sps:$4 sm:$0xff]  }
  0xcc   :  { %1060 = vmatprep.subr.bf16.mxu0 %v3653_v3  ;;  %1101 = vmatprep.subr.bf16.mxu1 %v3655_v6  ;;  %v3659_v3 = vcombine.high %v172_v60, %v176_v61  ;;  %v4037_v6 = vld [vmem:[#allocation10 + $0x4] ss:$16 sps:$4 sm:$0xff]   ;;  %v4110_v56 = vld [vmem:[#allocation10 + $0x188] ss:$16 sps:$4 sm:$0xff]  }
  0xcd   :  { %v4115_v57 = vld [vmem:[#allocation10 + $0x1a4] ss:$16 sps:$4 sm:$0xff]   ;;  %v4116_v60 = vld [vmem:[#allocation10 + $0x1a8] ss:$16 sps:$4 sm:$0xff]  }
  0xce   :  { %v4121_v61 = vld [vmem:[#allocation10 + $0x1c4] ss:$16 sps:$4 sm:$0xff]  }
  0xcf   :  { %1061 = vmatpush1.bf16.msra.mxu0 %v3652_v7  ;;  %1102 = vmatpush1.bf16.msra.mxu1 %v3654_v10  ;;  %v4040_v7 = vld [vmem:[#allocation10 + $0xc] ss:$16 sps:$4 sm:$0xff]   ;;  %v4043_v10 = vld [vmem:[#allocation10 + $0x24] ss:$16 sps:$4 sm:$0xff]  }
  0xd0   :  { %1128 = vmatprep.subr.bf16.mxu0 %v3601_v11  ;;  %1169 = vmatprep.subr.bf16.mxu1 %v3603_v16  ;;  %v4046_v11 = vld [vmem:[#allocation10 + $0x2c] ss:$16 sps:$4 sm:$0xff]   ;;  %v4049_v16 = vld [vmem:[#allocation10 + $0x44] ss:$16 sps:$4 sm:$0xff]  }
  0xd2   :  { %1079 = vmatmul.mubr.bf16.vlgmr.msra.gmra.mrb[8].mxu0 %v4769_v15  ;;  %1120 = vmatmul.mubr.bf16.vlgmr.msra.gmra.mrb[8].mxu1 %v4769_v15 }
  0xd3   :  { %1129 = vmatpush1.bf16.msra.mxu0 %v3600_v17  ;;  %1170 = vmatpush1.bf16.msra.mxu1 %v3602_v20  ;;  %v4052_v17 = vld [vmem:[#allocation10 + $0x4c] ss:$16 sps:$4 sm:$0xff]   ;;  %v4055_v20 = vld [vmem:[#allocation10 + $0x64] ss:$16 sps:$4 sm:$0xff]  }
  0xd4   :  { %1130 = vmatprep.subr.bf16.mxu0 %v3609_v21  ;;  %1171 = vmatprep.subr.bf16.mxu1 %v3611_v24  ;;  %v4058_v21 = vld [vmem:[#allocation10 + $0x6c] ss:$16 sps:$4 sm:$0xff]   ;;  %v4061_v24 = vld [vmem:[#allocation10 + $0x84] ss:$16 sps:$4 sm:$0xff]  }
  0xd5   :  { %1160 = vmatprep.mubr.bf16.mxu0 %v4627_v0  ;;  %1201 = vmatprep.mubr.bf16.mxu1 %v4627_v0  ;;  %v3633_v0 = vcombine.high %v147_v33, %v151_v34  ;;  %v4074_v33 = vld [vmem:[#allocation10 + $0xc8] ss:$16 sps:$4 sm:$0xff]   ;;  %v4079_v34 = vld [vmem:[#allocation10 + $0xe4] ss:$16 sps:$4 sm:$0xff]  }
  0xd7   :  { %1131 = vmatpush1.bf16.msra.mxu0 %v3608_v25  ;;  %1172 = vmatpush1.bf16.msra.mxu1 %v3610_v28  ;;  %v4064_v25 = vld [vmem:[#allocation10 + $0x8c] ss:$16 sps:$4 sm:$0xff]  }
  0xd8   :  { %1132 = vmatprep.subr.bf16.mxu0 %v3617_v29  ;;  %1173 = vmatprep.subr.bf16.mxu1 %v3619_v32  ;;  %v4070_v28 = vld [vmem:[#allocation10 + $0xac] ss:$16 sps:$4 sm:$0xff]   ;;  %v4065_v29 = vld [vmem:[#allocation10 + $0xa0] ss:$16 sps:$4 sm:$0xff]  }
  0xd9   :  { %v4076_v32 = vld [vmem:[#allocation10 + $0xcc] ss:$16 sps:$4 sm:$0xff]  }
  0xdb   :  { %1133 = vmatpush1.bf16.msra.mxu0 %v3616_v12  ;;  %1174 = vmatpush1.bf16.msra.mxu1 %v3618_v35  ;;  %v4071_v12 = vld [vmem:[#allocation10 + $0xc0] ss:$16 sps:$4 sm:$0xff]   ;;  %v4082_v35 = vld [vmem:[#allocation10 + $0xec] ss:$16 sps:$4 sm:$0xff]  }
  0xdc   :  { %1134 = vmatprep.subr.bf16.mxu0 %v3625_v36  ;;  %1175 = vmatprep.subr.bf16.mxu1 %v3627_v39  ;;  %v4077_v36 = vld [vmem:[#allocation10 + $0xe0] ss:$16 sps:$4 sm:$0xff]   ;;  %v4088_v39 = vld [vmem:[#allocation10 + $0x10c] ss:$16 sps:$4 sm:$0xff]  }
  0xdf   :  { %1135 = vmatpush1.bf16.msra.mxu0 %v3624_v40  ;;  %1176 = vmatpush1.bf16.msra.mxu1 %v3626_v43  ;;  %v4083_v40 = vld [vmem:[#allocation10 + $0x100] ss:$16 sps:$4 sm:$0xff]  }
  0xe0   :  { %1136 = vmatprep.subr.bf16.mxu0 %v3633_v0  ;;  %1177 = vmatprep.subr.bf16.mxu1 %v3635_v46  ;;  %v4089_v43 = vld [vmem:[#allocation10 + $0x120] ss:$16 sps:$4 sm:$0xff]   ;;  %v4094_v0 = vld [vmem:[#allocation10 + $0x12c] ss:$16 sps:$4 sm:$0xff]  }
  0xe1   :  { %v4100_v46 = vld [vmem:[#allocation10 + $0x14c] ss:$16 sps:$4 sm:$0xff]  }
  0xe3   :  { %1137 = vmatpush1.bf16.msra.mxu0 %v3632_v47  ;;  %1178 = vmatpush1.bf16.msra.mxu1 %v3634_v50  ;;  %v4095_v47 = vld [vmem:[#allocation10 + $0x140] ss:$16 sps:$4 sm:$0xff]   ;;  %v4106_v50 = vld [vmem:[#allocation10 + $0x16c] ss:$16 sps:$4 sm:$0xff]  }
  0xe4   :  { %1138 = vmatprep.subr.bf16.mxu0 %v3641_v51  ;;  %1179 = vmatprep.subr.bf16.mxu1 %v3643_v54  ;;  %v4101_v51 = vld [vmem:[#allocation10 + $0x160] ss:$16 sps:$4 sm:$0xff]   ;;  %v4112_v54 = vld [vmem:[#allocation10 + $0x18c] ss:$16 sps:$4 sm:$0xff]  }
  0xe7   :  { %1139 = vmatpush1.bf16.msra.mxu0 %v3640_v55  ;;  %1180 = vmatpush1.bf16.msra.mxu1 %v3642_v58  ;;  %v4107_v55 = vld [vmem:[#allocation10 + $0x180] ss:$16 sps:$4 sm:$0xff]   ;;  %v4118_v58 = vld [vmem:[#allocation10 + $0x1ac] ss:$16 sps:$4 sm:$0xff]  }
  0xe8   :  { %1140 = vmatprep.subr.bf16.mxu0 %v3649_v59  ;;  %1181 = vmatprep.subr.bf16.mxu1 %v3651_v62  ;;  %v4113_v59 = vld [vmem:[#allocation10 + $0x1a0] ss:$16 sps:$4 sm:$0xff]  }
  0xe9   :  { %v4119_v62 = vld [vmem:[#allocation10 + $0x1c0] ss:$16 sps:$4 sm:$0xff]  }
  0xeb   :  { %1141 = vmatpush1.bf16.msra.mxu0 %v3648_v63  ;;  %1182 = vmatpush1.bf16.msra.mxu1 %v3650_v1  ;;  %v4124_v63 = vld [vmem:[#allocation10 + $0x1cc] ss:$16 sps:$4 sm:$0xff]   ;;  %v4122_v1 = vld [vmem:[#allocation10 + $0x1c8] ss:$16 sps:$4 sm:$0xff]  }
  0xec   :  { %1142 = vmatprep.subr.bf16.mxu0 %v3657_v2  ;;  %1183 = vmatprep.subr.bf16.mxu1 %v3659_v3  ;;  %v4127_v2 = vld [vmem:[#allocation10 + $0x1e4] ss:$16 sps:$4 sm:$0xff]   ;;  %v4130_v3 = vld [vmem:[#allocation10 + $0x1ec] ss:$16 sps:$4 sm:$0xff]  }
  0xef   :  { %1143 = vmatpush1.bf16.msra.mxu0 %v3656_v4  ;;  %1184 = vmatpush1.bf16.msra.mxu1 %v3658_v5  ;;  %v4125_v4 = vld [vmem:[#allocation10 + $0x1e0] ss:$16 sps:$4 sm:$0xff]   ;;  %v4128_v5 = vld [vmem:[#allocation10 + $0x1e8] ss:$16 sps:$4 sm:$0xff]  }
  0xf0   :  { %2834 = vmatprep.subr.bf16.mxu0 %v4037_v6  ;;  %2998 = vmatprep.subr.bf16.mxu1 %v4040_v7  ;;  %v4133_v6 = vld [vmem:[#allocation10 + $0x204] ss:$16 sps:$4 sm:$0xff]   ;;  %v4136_v7 = vld [vmem:[#allocation10 + $0x20c] ss:$16 sps:$4 sm:$0xff]  }
  0xf2   :  { %1161 = vmatmul.mubr.bf16.vlgmr.msra.gmra.mrb[12].mxu0 %v4769_v15  ;;  %1202 = vmatmul.mubr.bf16.vlgmr.msra.gmra.mrb[12].mxu1 %v4769_v15  ;;  %v4059_v15 = vld [vmem:[#allocation10 + $0x80] ss:$16 sps:$4 sm:$0xff]  }
  0xf3   :  { %2835 = vmatpush1.bf16.msra.mxu0 %v4035_v8  ;;  %2999 = vmatpush1.bf16.msra.mxu1 %v4038_v9  ;;  %v1212_v8 = vlaneseq }
  0xf4   :  { %2836 = vmatprep.subr.bf16.mxu0 %v4043_v10  ;;  %3000 = vmatprep.subr.bf16.mxu1 %v4046_v11  ;;  %v1210_v11 = vld [vmem:[%s4867_s4] sm:$0xff] }
  0xf5   :  { %v4777_v9 = vshrl.u32 %v1212_v8, 7  ;;  %v4148_v8 = vld [vmem:[#allocation10 + $0x24c] ss:$16 sps:$4 sm:$0xff]  }
  0xf7   :  { %2837 = vmatpush1.bf16.msra.mxu0 %v4041_v13  ;;  %3001 = vmatpush1.bf16.msra.mxu1 %v4044_v14  ;;  %v1230_v10 = vsub.s32 4, %v4777_v9  ;;  %v1238_v13 = vsub.s32 6, %v4777_v9  ;;  %v1234_v14 = vsub.s32 5, %v4777_v9 }
  0xf8   :  { %2838 = vmatprep.subr.bf16.mxu0 %v4049_v16  ;;  %3002 = vmatprep.subr.bf16.mxu1 %v4052_v17  ;;  %v1242_v16 = vsub.s32 7, %v4777_v9 }
  0xf9   :  { %v4786_v17 = vrot.slane %v1210_v11, %v1230_v10  ;;  %v4143_v10 = vld [vmem:[#allocation10 + $0x240] ss:$16 sps:$4 sm:$0xff]  }
  0xfb   :  { %2839 = vmatpush1.bf16.msra.mxu0 %v4047_v18  ;;  %3003 = vmatpush1.bf16.msra.mxu1 %v4050_v19  ;;  %v4788_v18 = vrot.slane %v1210_v11, %v1238_v13  ;;  %v4790_v19 = vrot.slane %v1210_v11, %v1234_v14  ;;  %v4151_v13 = vld [vmem:[#allocation10 + $0x264] ss:$16 sps:$4 sm:$0xff]   ;;  %v4154_v14 = vld [vmem:[#allocation10 + $0x26c] ss:$16 sps:$4 sm:$0xff]  }
  0xfc   :  { %2840 = vmatprep.subr.bf16.mxu0 %v4055_v20  ;;  %3004 = vmatprep.subr.bf16.mxu1 %v4058_v21  ;;  %v4792_v20 = vrot.slane %v1210_v11, %v1242_v16  ;;  %v4149_v16 = vld [vmem:[#allocation10 + $0x260] ss:$16 sps:$4 sm:$0xff]  }
  0xff   :  { %2841 = vmatpush1.bf16.msra.mxu0 %v4053_v22  ;;  %3005 = vmatpush1.bf16.msra.mxu1 %v4056_v23 }
 0x100   :  { %2842 = vmatprep.subr.bf16.mxu0 %v4061_v24  ;;  %3006 = vmatprep.subr.bf16.mxu1 %v4064_v25 }
 0x103   :  { %2843 = vmatpush1.bf16.msra.mxu0 %v4059_v15  ;;  %3007 = vmatpush1.bf16.msra.mxu1 %v4062_v26 }
 0x104   :  { %2844 = vmatprep.subr.bf16.mxu0 %v4067_v27  ;;  %3008 = vmatprep.subr.bf16.mxu1 %v4070_v28 }
 0x107   :  { %2845 = vmatpush1.bf16.msra.mxu0 %v4065_v29  ;;  %3009 = vmatpush1.bf16.msra.mxu1 %v4068_v30 }
 0x108   :  { %2846 = vmatprep.subr.bf16.mxu0 %v4073_v31  ;;  %3010 = vmatprep.subr.bf16.mxu1 %v4076_v32 }
 0x10b   :  { %2847 = vmatpush1.bf16.msra.mxu0 %v4071_v12  ;;  %3011 = vmatpush1.bf16.msra.mxu1 %v4074_v33 }
 0x10c   :  { %2848 = vmatprep.subr.bf16.mxu0 %v4079_v34  ;;  %3012 = vmatprep.subr.bf16.mxu1 %v4082_v35  ;;  %v1214_v35 = vsub.s32 0, %v4777_v9 }
 0x10f   :  { %2849 = vmatpush1.bf16.msra.mxu0 %v4077_v36  ;;  %3013 = vmatpush1.bf16.msra.mxu1 %v4080_v37  ;;  %v1222_v36 = vsub.s32 2, %v4777_v9  ;;  %v1218_v37 = vsub.s32 1, %v4777_v9 }
 0x110   :  { %2850 = vmatprep.subr.bf16.mxu0 %v4085_v38  ;;  %3014 = vmatprep.subr.bf16.mxu1 %v4088_v39  ;;  %v1226_v38 = vsub.s32 3, %v4777_v9  ;;  %v1215_v39 = vrot.slane %v1210_v11, %v1214_v35 }
 0x113   :  { %2851 = vmatpush1.bf16.msra.mxu0 %v4083_v40  ;;  %3015 = vmatpush1.bf16.msra.mxu1 %v4086_v41  ;;  %v1223_v41 = vrot.slane %v1210_v11, %v1222_v36 }
 0x114   :  { %2852 = vmatprep.subr.bf16.mxu0 %v4091_v42  ;;  %3016 = vmatprep.subr.bf16.mxu1 %v4094_v0  ;;  %v1219_v42 = vrot.slane %v1210_v11, %v1218_v37 }
 0x117   :  { %2853 = vmatpush1.bf16.msra.mxu0 %v4089_v43  ;;  %3017 = vmatpush1.bf16.msra.mxu1 %v4092_v44 }
 0x118   :  { %2854 = vmatprep.subr.bf16.mxu0 %v4097_v45  ;;  %3018 = vmatprep.subr.bf16.mxu1 %v4100_v46  ;;  %v1227_v45 = vrot.slane %v1210_v11, %v1226_v38  ;;  %v4146_v11 = vld [vmem:[#allocation10 + $0x248] ss:$16 sps:$4 sm:$0xff]  }
 0x11b   :  { %2855 = vmatpush1.bf16.msra.mxu0 %v4095_v47  ;;  %3019 = vmatpush1.bf16.msra.mxu1 %v4098_v48 }
 0x11c   :  { %2856 = vmatprep.subr.bf16.mxu0 %v4103_v49  ;;  %3020 = vmatprep.subr.bf16.mxu1 %v4106_v50 }
 0x11f   :  { %2857 = vmatpush1.bf16.msra.mxu0 %v4101_v51  ;;  %3021 = vmatpush1.bf16.msra.mxu1 %v4104_v52 }
 0x120   :  { %2858 = vmatprep.subr.bf16.mxu0 %v4109_v53  ;;  %3022 = vmatprep.subr.bf16.mxu1 %v4112_v54 }
 0x123   :  { %2859 = vmatpush1.bf16.msra.mxu0 %v4107_v55  ;;  %3023 = vmatpush1.bf16.msra.mxu1 %v4110_v56 }
 0x124   :  { %2860 = vmatprep.subr.bf16.mxu0 %v4115_v57  ;;  %3024 = vmatprep.subr.bf16.mxu1 %v4118_v58 }
 0x127   :  { %2861 = vmatpush1.bf16.msra.mxu0 %v4113_v59  ;;  %3025 = vmatpush1.bf16.msra.mxu1 %v4116_v60 }
 0x128   :  { %2862 = vmatprep.subr.bf16.mxu0 %v4121_v61  ;;  %3026 = vmatprep.subr.bf16.mxu1 %v4124_v63  ;;  %v4134_v63 = vld [vmem:[#allocation10 + $0x208] ss:$16 sps:$4 sm:$0xff]  }
 0x12b   :  { %2863 = vmatpush1.bf16.msra.mxu0 %v4119_v62  ;;  %3027 = vmatpush1.bf16.msra.mxu1 %v4122_v1  ;;  %v4131_v62 = vld [vmem:[#allocation10 + $0x200] ss:$16 sps:$4 sm:$0xff]  }
 0x12c   :  { %2864 = vmatprep.subr.bf16.mxu0 %v4127_v2  ;;  %3028 = vmatprep.subr.bf16.mxu1 %v4130_v3  ;;  %v4139_v2 = vld [vmem:[#allocation10 + $0x224] ss:$16 sps:$4 sm:$0xff]   ;;  %v4142_v3 = vld [vmem:[#allocation10 + $0x22c] ss:$16 sps:$4 sm:$0xff]  }
 0x12f   :  { %2865 = vmatpush1.bf16.msra.mxu0 %v4125_v4  ;;  %3029 = vmatpush1.bf16.msra.mxu1 %v4128_v5  ;;  %v4137_v5 = vld [vmem:[#allocation10 + $0x220] ss:$16 sps:$4 sm:$0xff]  }
 0x130   :  { %2875 = vmatprep.subr.bf16.mxu0 %v4133_v6  ;;  %3039 = vmatprep.subr.bf16.mxu1 %v4136_v7  ;;  %v4140_v6 = vld [vmem:[#allocation10 + $0x228] ss:$16 sps:$4 sm:$0xff]   ;;  %v4145_v7 = vld [vmem:[#allocation10 + $0x244] ss:$16 sps:$4 sm:$0xff]  }
 0x165   :  { %v596_v21 = vpop.f32.mrb[0].mxu0  ;;  %v637_v23 = vpop.f32.mrb[0].mxu1 }
 0x166   :  { %v598_v22 = vpop.f32.mrb[1].mxu0  ;;  %v639_v25 = vpop.f32.mrb[1].mxu1 }
 0x167   :  { %v600_v24 = vpop.f32.mrb[2].mxu0  ;;  %v641_v26 = vpop.f32.mrb[2].mxu1 }
 0x168   :  { %v601_v15 = vpop.f32.mrb[3].mxu0  ;;  %v642_v27 = vpop.f32.mrb[3].mxu1  ;;  %v4155_v24 = vld [vmem:[#allocation10 + $0x280] ss:$16 sps:$4 sm:$0xff]   ;;  %v4166_v26 = vld [vmem:[#allocation10 + $0x2ac] ss:$16 sps:$4 sm:$0xff]  }
 0x169   :  { %v4163_v15 = vld [vmem:[#allocation10 + $0x2a4] ss:$16 sps:$4 sm:$0xff]   ;;  %v4161_v27 = vld [vmem:[#allocation10 + $0x2a0] ss:$16 sps:$4 sm:$0xff]  }
 0x185   :  { %v4794_v28 = vpop.f32.mrb[4].mxu0  ;;  %v4798_v30 = vpop.f32.mrb[4].mxu1 }
 0x186   :  { %v4796_v29 = vpop.f32.mrb[5].mxu0  ;;  %v4800_v32 = vpop.f32.mrb[5].mxu1 }
 0x187   :  { %v682_v31 = vpop.f32.mrb[6].mxu0  ;;  %v723_v33 = vpop.f32.mrb[6].mxu1 }
 0x188   :  { %v683_v12 = vpop.f32.mrb[7].mxu0  ;;  %v724_v34 = vpop.f32.mrb[7].mxu1  ;;  %v4164_v31 = vld [vmem:[#allocation10 + $0x2a8] ss:$16 sps:$4 sm:$0xff]   ;;  %v4172_v33 = vld [vmem:[#allocation10 + $0x2cc] ss:$16 sps:$4 sm:$0xff]  }
 0x189   :  { %v4169_v12 = vld [vmem:[#allocation10 + $0x2c4] ss:$16 sps:$4 sm:$0xff]  }
 0x1a5   :  { %v1080_v40 = vpop.f32.mrb[8].mxu0  ;;  %v1121_v0 = vpop.f32.mrb[8].mxu1 }
 0x1a6   :  { %v1081_v43 = vadd.f32 %v1080_v40, %v596_v21  ;;  %v1082_v44 = vpop.f32.mrb[9].mxu0  ;;  %v1122_v46 = vadd.f32 %v1121_v0, %v637_v23  ;;  %v1123_v48 = vpop.f32.mrb[9].mxu1  ;;  %v4152_v21 = vld [vmem:[#allocation10 + $0x268] ss:$16 sps:$4 sm:$0xff]   ;;  %v4160_v23 = vld [vmem:[#allocation10 + $0x28c] ss:$16 sps:$4 sm:$0xff]  }
 0x1a7   :  { %v1083_v47 = vadd.f32 %v1082_v44, %v598_v22  ;;  %v1084_v49 = vpop.f32.mrb[10].mxu0  ;;  %v1124_v51 = vadd.f32 %v1123_v48, %v639_v25  ;;  %v1125_v53 = vpop.f32.mrb[10].mxu1  ;;  %v4157_v22 = vld [vmem:[#allocation10 + $0x284] ss:$16 sps:$4 sm:$0xff]   ;;  %v4158_v25 = vld [vmem:[#allocation10 + $0x288] ss:$16 sps:$4 sm:$0xff]  }
 0x1a8   :  { %v1252_v50 = vadd.f32 %v1215_v39, %v1081_v43  ;;  %v1085_v52 = vpop.f32.mrb[11].mxu0  ;;  %v4814_v54 = vadd.f32 %v1223_v41, %v1122_v46  ;;  %v1126_v56 = vpop.f32.mrb[11].mxu1  ;;  %v4167_v39 = vld [vmem:[#allocation10 + $0x2c0] ss:$16 sps:$4 sm:$0xff]   ;;  %v4170_v40 = vld [vmem:[#allocation10 + $0x2c8] ss:$16 sps:$4 sm:$0xff]  }
 0x1a9   :  { %v1253_v55 = vadd.f32 %v1219_v42, %v1083_v47  ;;  %v1255_v58 = vadd.f32 %v1227_v45, %v1124_v51  ;;  %v4175_v0 = vld [vmem:[#allocation10 + $0x2e4] ss:$16 sps:$4 sm:$0xff]   ;;  %v4178_v44 = vld [vmem:[#allocation10 + $0x2ec] ss:$16 sps:$4 sm:$0xff]  }
 0x1aa   :  { %v1260_v57 = vmax.f32 %v1252_v50, 0.0 }
 0x1ab   :  { %v1261_v59 = vmax.f32 %v1253_v55, 0.0  ;;  %v1263_v60 = vmax.f32 %v1255_v58, 0.0  ;;  %v4176_v55 = vld [vmem:[#allocation10 + $0x2e8] ss:$16 sps:$4 sm:$0xff]   ;;  %v4190_v58 = vld [vmem:[#allocation10 + $0x32c] ss:$16 sps:$4 sm:$0xff]  }
 0x1ac   :  { %v1268_v1 = vpack.c.bf16 %v1260_v57, %v1260_v57  ;;  %v4179_v57 = vld [vmem:[#allocation10 + $0x300] ss:$16 sps:$4 sm:$0xff]  }
 0x1ad   :  { %v1269_v61 = vpack.c.bf16 %v1261_v59, %v1261_v59  ;;  %v1271_v4 = vpack.c.bf16 %v1263_v60, %v1263_v60  ;;  %v4185_v59 = vld [vmem:[#allocation10 + $0x320] ss:$16 sps:$4 sm:$0xff]   ;;  %v4188_v60 = vld [vmem:[#allocation10 + $0x328] ss:$16 sps:$4 sm:$0xff]  }
 0x1af   :  { %2866 = vmatprep.mubr.bf16.mxu0 %v1269_v61  ;;  %3030 = vmatprep.mubr.bf16.mxu1 %v1269_v61  ;;  %v4196_v61 = vld [vmem:[#allocation10 + $0x34c] ss:$16 sps:$4 sm:$0xff]  }
 0x1b0   :  { %2867 = vmatmul.mubr.bf16.vlgmr.msra.gmra.mrb[16].mxu0 %v1268_v1  ;;  %3031 = vmatmul.mubr.bf16.vlgmr.msra.gmra.mrb[16].mxu1 %v1268_v1  ;;  %v4199_v1 = vld [vmem:[#allocation10 + $0x364] ss:$16 sps:$4 sm:$0xff]  }
 0x1b1   :  { %2876 = vmatpush1.bf16.msra.mxu0 %v4131_v62  ;;  %3040 = vmatpush1.bf16.msra.mxu1 %v4134_v63  ;;  %v4191_v62 = vld [vmem:[#allocation10 + $0x340] ss:$16 sps:$4 sm:$0xff]   ;;  %v4194_v63 = vld [vmem:[#allocation10 + $0x348] ss:$16 sps:$4 sm:$0xff]  }
 0x1b2   :  { %2907 = vmatprep.mubr.bf16.mxu0 %v1271_v4  ;;  %3071 = vmatprep.mubr.bf16.mxu1 %v1271_v4  ;;  %v4200_v4 = vld [vmem:[#allocation10 + $0x368] ss:$16 sps:$4 sm:$0xff]  }
 0x1b3   :  { %2877 = vmatprep.subr.bf16.mxu0 %v4139_v2  ;;  %3041 = vmatprep.subr.bf16.mxu1 %v4142_v3  ;;  %v4202_v2 = vld [vmem:[#allocation10 + $0x36c] ss:$16 sps:$4 sm:$0xff]   ;;  %v4197_v3 = vld [vmem:[#allocation10 + $0x360] ss:$16 sps:$4 sm:$0xff]  }
 0x1b5   :  { %2878 = vmatpush1.bf16.msra.mxu0 %v4137_v5  ;;  %3042 = vmatpush1.bf16.msra.mxu1 %v4140_v6  ;;  %v4205_v5 = vld [vmem:[#allocation10 + $0x384] ss:$16 sps:$4 sm:$0xff]   ;;  %v4208_v6 = vld [vmem:[#allocation10 + $0x38c] ss:$16 sps:$4 sm:$0xff]  }
 0x1b6   :  { %2879 = vmatprep.subr.bf16.mxu0 %v4145_v7  ;;  %3043 = vmatprep.subr.bf16.mxu1 %v4148_v8  ;;  %v4203_v7 = vld [vmem:[#allocation10 + $0x380] ss:$16 sps:$4 sm:$0xff]   ;;  %v4206_v8 = vld [vmem:[#allocation10 + $0x388] ss:$16 sps:$4 sm:$0xff]  }
 0x1b9   :  { %2880 = vmatpush1.bf16.msra.mxu0 %v4143_v10  ;;  %3044 = vmatpush1.bf16.msra.mxu1 %v4146_v11  ;;  %v4211_v10 = vld [vmem:[#allocation10 + $0x3a4] ss:$16 sps:$4 sm:$0xff]   ;;  %v4214_v11 = vld [vmem:[#allocation10 + $0x3ac] ss:$16 sps:$4 sm:$0xff]  }
 0x1ba   :  { %2881 = vmatprep.subr.bf16.mxu0 %v4151_v13  ;;  %3045 = vmatprep.subr.bf16.mxu1 %v4154_v14  ;;  %v4209_v13 = vld [vmem:[#allocation10 + $0x3a0] ss:$16 sps:$4 sm:$0xff]   ;;  %v4212_v14 = vld [vmem:[#allocation10 + $0x3a8] ss:$16 sps:$4 sm:$0xff]  }
 0x1bd   :  { %2882 = vmatpush1.bf16.msra.mxu0 %v4149_v16  ;;  %3046 = vmatpush1.bf16.msra.mxu1 %v4152_v21  ;;  %v4217_v16 = vld [vmem:[#allocation10 + $0x3c4] ss:$16 sps:$4 sm:$0xff]   ;;  %v4220_v21 = vld [vmem:[#allocation10 + $0x3cc] ss:$16 sps:$4 sm:$0xff]  }
 0x1be   :  { %2883 = vmatprep.subr.bf16.mxu0 %v4157_v22  ;;  %3047 = vmatprep.subr.bf16.mxu1 %v4160_v23  ;;  %v4215_v22 = vld [vmem:[#allocation10 + $0x3c0] ss:$16 sps:$4 sm:$0xff]   ;;  %v4218_v23 = vld [vmem:[#allocation10 + $0x3c8] ss:$16 sps:$4 sm:$0xff]  }
 0x1c1   :  { %2884 = vmatpush1.bf16.msra.mxu0 %v4155_v24  ;;  %3048 = vmatpush1.bf16.msra.mxu1 %v4158_v25  ;;  %v4223_v24 = vld [vmem:[#allocation10 + $0x3e4] ss:$16 sps:$4 sm:$0xff]   ;;  %v4226_v25 = vld [vmem:[#allocation10 + $0x3ec] ss:$16 sps:$4 sm:$0xff]  }
 0x1c2   :  { %2885 = vmatprep.subr.bf16.mxu0 %v4163_v15  ;;  %3049 = vmatprep.subr.bf16.mxu1 %v4166_v26  ;;  %v4221_v15 = vld [vmem:[#allocation10 + $0x3e0] ss:$16 sps:$4 sm:$0xff]   ;;  %v4224_v26 = vld [vmem:[#allocation10 + $0x3e8] ss:$16 sps:$4 sm:$0xff]  }
 0x1c5   :  { %2886 = vmatpush1.bf16.msra.mxu0 %v4161_v27  ;;  %3050 = vmatpush1.bf16.msra.mxu1 %v4164_v31  ;;  %v1162_v34 = vpop.f32.mrb[12].mxu0  ;;  %v1203_v42 = vpop.f32.mrb[12].mxu1  ;;  %v1262_v27 = vmax.f32 %v4814_v54, 0.0  ;;  %v4229_v31 = vld [vmem:[#allocation10 + $0x404] ss:$16 sps:$4 sm:$0xff]  }
 0x1c6   :  { %v1163_v41 = vadd.f32 %v1162_v34, %v4794_v28  ;;  %v1164_v43 = vpop.f32.mrb[13].mxu0  ;;  %2887 = vmatprep.subr.bf16.mxu0 %v4169_v12  ;;  %3051 = vmatprep.subr.bf16.mxu1 %v4172_v33  ;;  %v1204_v45 = vadd.f32 %v1203_v42, %v4798_v30  ;;  %v1205_v47 = vpop.f32.mrb[13].mxu1  ;;  %v4173_v30 = vld [vmem:[#allocation10 + $0x2e0] ss:$16 sps:$4 sm:$0xff]   ;;  %v4232_v12 = vld [vmem:[#allocation10 + $0x40c] ss:$16 sps:$4 sm:$0xff]  }
 0x1c7   :  { %v1165_v46 = vadd.f32 %v1164_v43, %v4796_v29  ;;  %v1166_v48 = vpop.f32.mrb[14].mxu0  ;;  %v1206_v50 = vadd.f32 %v1205_v47, %v4800_v32  ;;  %v1207_v52 = vpop.f32.mrb[14].mxu1  ;;  %v4184_v32 = vld [vmem:[#allocation10 + $0x30c] ss:$16 sps:$4 sm:$0xff]   ;;  %v4227_v34 = vld [vmem:[#allocation10 + $0x400] ss:$16 sps:$4 sm:$0xff]  }
 0x1c8   :  { %v4820_v49 = vadd.f32 %v4786_v17, %v1163_v41  ;;  %v1167_v51 = vpop.f32.mrb[15].mxu0  ;;  %v4824_v28 = vadd.f32 %v4788_v18, %v1204_v45  ;;  %v1208_v29 = vpop.f32.mrb[15].mxu1  ;;  %v4181_v17 = vld [vmem:[#allocation10 + $0x304] ss:$16 sps:$4 sm:$0xff]   ;;  %v4182_v18 = vld [vmem:[#allocation10 + $0x308] ss:$16 sps:$4 sm:$0xff]  }
 0x1c9   :  { %v4827_v53 = vadd.f32 %v4790_v19, %v1165_v46  ;;  %2888 = vmatpush1.bf16.msra.mxu0 %v4167_v39  ;;  %3052 = vmatpush1.bf16.msra.mxu1 %v4170_v40  ;;  %v4830_v56 = vadd.f32 %v4792_v20, %v1206_v50  ;;  %v4187_v19 = vld [vmem:[#allocation10 + $0x324] ss:$16 sps:$4 sm:$0xff]   ;;  %v1270_v39 = vpack.c.bf16 %v1262_v27, %v1262_v27  ;;  %v4230_v40 = vld [vmem:[#allocation10 + $0x408] ss:$16 sps:$4 sm:$0xff]   ;;  %v4238_v43 = vld [vmem:[#allocation10 + $0x42c] ss:$16 sps:$4 sm:$0xff]  }
 0x1ca   :  { %2889 = vmatprep.subr.bf16.mxu0 %v4175_v0  ;;  %3053 = vmatprep.subr.bf16.mxu1 %v4178_v44  ;;  %v4193_v20 = vld [vmem:[#allocation10 + $0x344] ss:$16 sps:$4 sm:$0xff]   ;;  %v4233_v54 = vld [vmem:[#allocation10 + $0x420] ss:$16 sps:$4 sm:$0xff]   ;;  %v4236_v0 = vld [vmem:[#allocation10 + $0x428] ss:$16 sps:$4 sm:$0xff]  }
 0x1cb   :  { %v1265_v33 = vmax.f32 %v4827_v53, 0.0  ;;  %v4235_v42 = vld [vmem:[#allocation10 + $0x424] ss:$16 sps:$4 sm:$0xff]   ;;  %v4244_v45 = vld [vmem:[#allocation10 + $0x44c] ss:$16 sps:$4 sm:$0xff]  }
 0x1cc   :  { %v4241_v44 = vld [vmem:[#allocation10 + $0x444] ss:$16 sps:$4 sm:$0xff]   ;;  %v4239_v46 = vld [vmem:[#allocation10 + $0x440] ss:$16 sps:$4 sm:$0xff]   ;;  %v4242_v47 = vld [vmem:[#allocation10 + $0x448] ss:$16 sps:$4 sm:$0xff]  }
 0x1cd   :  { %2890 = vmatpush1.bf16.msra.mxu0 %v4173_v30  ;;  %3054 = vmatpush1.bf16.msra.mxu1 %v4176_v55  ;;  %v1273_v41 = vpack.c.bf16 %v1265_v33, %v1265_v33  ;;  %v4247_v48 = vld [vmem:[#allocation10 + $0x464] ss:$16 sps:$4 sm:$0xff]   ;;  %v4250_v50 = vld [vmem:[#allocation10 + $0x46c] ss:$16 sps:$4 sm:$0xff]   ;;  %v4245_v51 = vld [vmem:[#allocation10 + $0x460] ss:$16 sps:$4 sm:$0xff]  }
 0x1ce   :  { %2891 = vmatprep.subr.bf16.mxu0 %v4181_v17  ;;  %3055 = vmatprep.subr.bf16.mxu1 %v4184_v32  ;;  %v4248_v52 = vld [vmem:[#allocation10 + $0x468] ss:$16 sps:$4 sm:$0xff]   ;;  %v4253_v53 = vld [vmem:[#allocation10 + $0x484] ss:$16 sps:$4 sm:$0xff]   ;;  %v4256_v30 = vld [vmem:[#allocation10 + $0x48c] ss:$16 sps:$4 sm:$0xff]  }
 0x1cf   :  { %v4251_v55 = vld [vmem:[#allocation10 + $0x480] ss:$16 sps:$4 sm:$0xff]   ;;  %v4254_v29 = vld [vmem:[#allocation10 + $0x488] ss:$16 sps:$4 sm:$0xff]   ;;  %v4259_v17 = vld [vmem:[#allocation10 + $0x4a4] ss:$16 sps:$4 sm:$0xff]  }
 0x1d0   :  { %v4262_v32 = vld [vmem:[#allocation10 + $0x4ac] ss:$16 sps:$4 sm:$0xff]   ;;  %v4307_v27 = vld [vmem:[#allocation10 + $0x5a4] ss:$16 sps:$4 sm:$0xff]   ;;  %v4308_v33 = vld [vmem:[#allocation10 + $0x5a8] ss:$16 sps:$4 sm:$0xff]  }
 0x1d1   :  { %2892 = vmatpush1.bf16.msra.mxu0 %v4179_v57  ;;  %3056 = vmatpush1.bf16.msra.mxu1 %v4182_v18  ;;  %v4257_v57 = vld [vmem:[#allocation10 + $0x4a0] ss:$16 sps:$4 sm:$0xff]   ;;  %v4260_v18 = vld [vmem:[#allocation10 + $0x4a8] ss:$16 sps:$4 sm:$0xff]  }
 0x1d2   :  { %2893 = vmatprep.subr.bf16.mxu0 %v4187_v19  ;;  %3057 = vmatprep.subr.bf16.mxu1 %v4190_v58  ;;  %v4265_v19 = vld [vmem:[#allocation10 + $0x4c4] ss:$16 sps:$4 sm:$0xff]   ;;  %v4268_v58 = vld [vmem:[#allocation10 + $0x4cc] ss:$16 sps:$4 sm:$0xff]  }
 0x1d5   :  { %2894 = vmatpush1.bf16.msra.mxu0 %v4185_v59  ;;  %3058 = vmatpush1.bf16.msra.mxu1 %v4188_v60  ;;  %v4263_v59 = vld [vmem:[#allocation10 + $0x4c0] ss:$16 sps:$4 sm:$0xff]   ;;  %v4266_v60 = vld [vmem:[#allocation10 + $0x4c8] ss:$16 sps:$4 sm:$0xff]  }
 0x1d6   :  { %2895 = vmatprep.subr.bf16.mxu0 %v4193_v20  ;;  %3059 = vmatprep.subr.bf16.mxu1 %v4196_v61  ;;  %v4271_v20 = vld [vmem:[#allocation10 + $0x4e4] ss:$16 sps:$4 sm:$0xff]   ;;  %v4274_v61 = vld [vmem:[#allocation10 + $0x4ec] ss:$16 sps:$4 sm:$0xff]  }
 0x1d9   :  { %2896 = vmatpush1.bf16.msra.mxu0 %v4191_v62  ;;  %3060 = vmatpush1.bf16.msra.mxu1 %v4194_v63  ;;  %v4269_v62 = vld [vmem:[#allocation10 + $0x4e0] ss:$16 sps:$4 sm:$0xff]   ;;  %v4272_v63 = vld [vmem:[#allocation10 + $0x4e8] ss:$16 sps:$4 sm:$0xff]  }
 0x1da   :  { %2897 = vmatprep.subr.bf16.mxu0 %v4199_v1  ;;  %3061 = vmatprep.subr.bf16.mxu1 %v4202_v2  ;;  %v4277_v1 = vld [vmem:[#allocation10 + $0x504] ss:$16 sps:$4 sm:$0xff]   ;;  %v4280_v2 = vld [vmem:[#allocation10 + $0x50c] ss:$16 sps:$4 sm:$0xff]  }
 0x1dd   :  { %2898 = vmatpush1.bf16.msra.mxu0 %v4197_v3  ;;  %3062 = vmatpush1.bf16.msra.mxu1 %v4200_v4  ;;  %v4275_v3 = vld [vmem:[#allocation10 + $0x500] ss:$16 sps:$4 sm:$0xff]   ;;  %v4278_v4 = vld [vmem:[#allocation10 + $0x508] ss:$16 sps:$4 sm:$0xff]  }
 0x1de   :  { %2899 = vmatprep.subr.bf16.mxu0 %v4205_v5  ;;  %3063 = vmatprep.subr.bf16.mxu1 %v4208_v6  ;;  %v4283_v5 = vld [vmem:[#allocation10 + $0x524] ss:$16 sps:$4 sm:$0xff]   ;;  %v4286_v6 = vld [vmem:[#allocation10 + $0x52c] ss:$16 sps:$4 sm:$0xff]  }
 0x1e1   :  { %2900 = vmatpush1.bf16.msra.mxu0 %v4203_v7  ;;  %3064 = vmatpush1.bf16.msra.mxu1 %v4206_v8  ;;  %v4281_v7 = vld [vmem:[#allocation10 + $0x520] ss:$16 sps:$4 sm:$0xff]   ;;  %v4284_v8 = vld [vmem:[#allocation10 + $0x528] ss:$16 sps:$4 sm:$0xff]  }
 0x1e2   :  { %2901 = vmatprep.subr.bf16.mxu0 %v4211_v10  ;;  %3065 = vmatprep.subr.bf16.mxu1 %v4214_v11  ;;  %v4289_v10 = vld [vmem:[#allocation10 + $0x544] ss:$16 sps:$4 sm:$0xff]   ;;  %v4292_v11 = vld [vmem:[#allocation10 + $0x54c] ss:$16 sps:$4 sm:$0xff]  }
 0x1e5   :  { %2902 = vmatpush1.bf16.msra.mxu0 %v4209_v13  ;;  %3066 = vmatpush1.bf16.msra.mxu1 %v4212_v14  ;;  %v4287_v13 = vld [vmem:[#allocation10 + $0x540] ss:$16 sps:$4 sm:$0xff]   ;;  %v4290_v14 = vld [vmem:[#allocation10 + $0x548] ss:$16 sps:$4 sm:$0xff]  }
 0x1e6   :  { %2903 = vmatprep.subr.bf16.mxu0 %v4217_v16  ;;  %3067 = vmatprep.subr.bf16.mxu1 %v4220_v21  ;;  %v4295_v16 = vld [vmem:[#allocation10 + $0x564] ss:$16 sps:$4 sm:$0xff]   ;;  %v4298_v21 = vld [vmem:[#allocation10 + $0x56c] ss:$16 sps:$4 sm:$0xff]  }
 0x1e9   :  { %2904 = vmatpush1.bf16.msra.mxu0 %v4215_v22  ;;  %3068 = vmatpush1.bf16.msra.mxu1 %v4218_v23  ;;  %v4293_v22 = vld [vmem:[#allocation10 + $0x560] ss:$16 sps:$4 sm:$0xff]   ;;  %v4296_v23 = vld [vmem:[#allocation10 + $0x568] ss:$16 sps:$4 sm:$0xff]  }
 0x1ea   :  { %2905 = vmatprep.subr.bf16.mxu0 %v4223_v24  ;;  %3069 = vmatprep.subr.bf16.mxu1 %v4226_v25  ;;  %v4301_v24 = vld [vmem:[#allocation10 + $0x584] ss:$16 sps:$4 sm:$0xff]   ;;  %v4304_v25 = vld [vmem:[#allocation10 + $0x58c] ss:$16 sps:$4 sm:$0xff]  }
 0x1ed   :  { %2906 = vmatpush1.bf16.msra.mxu0 %v4221_v15  ;;  %3070 = vmatpush1.bf16.msra.mxu1 %v4224_v26  ;;  %v4299_v15 = vld [vmem:[#allocation10 + $0x580] ss:$16 sps:$4 sm:$0xff]   ;;  %v4302_v26 = vld [vmem:[#allocation10 + $0x588] ss:$16 sps:$4 sm:$0xff]  }
 0x1ee   :  { %2916 = vmatprep.subr.bf16.mxu0 %v4229_v31  ;;  %3080 = vmatprep.subr.bf16.mxu1 %v4232_v12  ;;  %v4310_v31 = vld [vmem:[#allocation10 + $0x5ac] ss:$16 sps:$4 sm:$0xff]   ;;  %v4305_v12 = vld [vmem:[#allocation10 + $0x5a0] ss:$16 sps:$4 sm:$0xff]  }
 0x1f0   :  { %2908 = vmatmul.mubr.bf16.vlgmr.msra.gmra.mrb[16].mxu0 %v1270_v39  ;;  %3072 = vmatmul.mubr.bf16.vlgmr.msra.gmra.mrb[16].mxu1 %v1270_v39  ;;  %v4316_v39 = vld [vmem:[#allocation10 + $0x5cc] ss:$16 sps:$4 sm:$0xff]  }
 0x1f1   :  { %2917 = vmatpush1.bf16.msra.mxu0 %v4227_v34  ;;  %2948 = vmatprep.mubr.bf16.mxu0 %v1273_v41  ;;  %v4313_v34 = vld [vmem:[#allocation10 + $0x5c4] ss:$16 sps:$4 sm:$0xff]  }
 0x1f2   :  { %3081 = vmatpush1.bf16.msra.mxu1 %v4230_v40  ;;  %3112 = vmatprep.mubr.bf16.mxu1 %v1273_v41  ;;  %v4311_v40 = vld [vmem:[#allocation10 + $0x5c0] ss:$16 sps:$4 sm:$0xff]   ;;  %v4314_v41 = vld [vmem:[#allocation10 + $0x5c8] ss:$16 sps:$4 sm:$0xff]  }
 0x1f3   :  { %2918 = vmatprep.subr.bf16.mxu0 %v4235_v42  ;;  %3082 = vmatprep.subr.bf16.mxu1 %v4238_v43  ;;  %v4319_v42 = vld [vmem:[#allocation10 + $0x5e4] ss:$16 sps:$4 sm:$0xff]   ;;  %v4322_v43 = vld [vmem:[#allocation10 + $0x5ec] ss:$16 sps:$4 sm:$0xff]  }
 0x1f5   :  { %2919 = vmatpush1.bf16.msra.mxu0 %v4233_v54  ;;  %v4317_v54 = vld [vmem:[#allocation10 + $0x5e0] ss:$16 sps:$4 sm:$0xff]  }
 0x1f6   :  { %3083 = vmatpush1.bf16.msra.mxu1 %v4236_v0  ;;  %2920 = vmatprep.subr.bf16.mxu0 %v4241_v44  ;;  %v1264_v0 = vmax.f32 %v4820_v49, 0.0  ;;  %v4320_v44 = vld [vmem:[#allocation10 + $0x5e8] ss:$16 sps:$4 sm:$0xff]   ;;  %v4329_v49 = vld [vmem:[#allocation10 + $0x620] ss:$16 sps:$4 sm:$0xff]  }
 0x1f7   :  { %3084 = vmatprep.subr.bf16.mxu1 %v4244_v45  ;;  %v4325_v45 = vld [vmem:[#allocation10 + $0x604] ss:$16 sps:$4 sm:$0xff]  }
 0x1f9   :  { %2921 = vmatpush1.bf16.msra.mxu0 %v4239_v46  ;;  %v4328_v46 = vld [vmem:[#allocation10 + $0x60c] ss:$16 sps:$4 sm:$0xff]  }
 0x1fa   :  { %3085 = vmatpush1.bf16.msra.mxu1 %v4242_v47  ;;  %2922 = vmatprep.subr.bf16.mxu0 %v4247_v48  ;;  %v1267_v47 = vmax.f32 %v4830_v56, 0.0  ;;  %v4323_v48 = vld [vmem:[#allocation10 + $0x600] ss:$16 sps:$4 sm:$0xff]   ;;  %v4340_v56 = vld [vmem:[#allocation10 + $0x64c] ss:$16 sps:$4 sm:$0xff]  }
 0x1fb   :  { %3086 = vmatprep.subr.bf16.mxu1 %v4250_v50  ;;  %v1272_v50 = vpack.c.bf16 %v1264_v0, %v1264_v0  ;;  %v4406_v0 = vld [vmem:[#allocation10 + $0x7ac] ss:$16 sps:$4 sm:$0xff]  }
 0x1fd   :  { %2923 = vmatpush1.bf16.msra.mxu0 %v4245_v51  ;;  %v4326_v51 = vld [vmem:[#allocation10 + $0x608] ss:$16 sps:$4 sm:$0xff]  }
 0x1fe   :  { %3087 = vmatpush1.bf16.msra.mxu1 %v4248_v52  ;;  %2924 = vmatprep.subr.bf16.mxu0 %v4253_v53  ;;  %v4331_v52 = vld [vmem:[#allocation10 + $0x624] ss:$16 sps:$4 sm:$0xff]   ;;  %v1275_v53 = vpack.c.bf16 %v1267_v47, %v1267_v47  ;;  %v4412_v47 = vld [vmem:[#allocation10 + $0x7cc] ss:$16 sps:$4 sm:$0xff]  }
 0x1ff   :  { %3088 = vmatprep.subr.bf16.mxu1 %v4256_v30  ;;  %v4334_v30 = vld [vmem:[#allocation10 + $0x62c] ss:$16 sps:$4 sm:$0xff]  }
 0x201   :  { %2925 = vmatpush1.bf16.msra.mxu0 %v4251_v55  ;;  %v4332_v55 = vld [vmem:[#allocation10 + $0x628] ss:$16 sps:$4 sm:$0xff]  }
 0x202   :  { %3089 = vmatpush1.bf16.msra.mxu1 %v4254_v29  ;;  %2926 = vmatprep.subr.bf16.mxu0 %v4259_v17  ;;  %v4337_v29 = vld [vmem:[#allocation10 + $0x644] ss:$16 sps:$4 sm:$0xff]   ;;  %v4335_v17 = vld [vmem:[#allocation10 + $0x640] ss:$16 sps:$4 sm:$0xff]  }
 0x203   :  { %3090 = vmatprep.subr.bf16.mxu1 %v4262_v32  ;;  %v4338_v32 = vld [vmem:[#allocation10 + $0x648] ss:$16 sps:$4 sm:$0xff]  }
 0x205   :  { %2927 = vmatpush1.bf16.msra.mxu0 %v4257_v57  ;;  %v4343_v57 = vld [vmem:[#allocation10 + $0x664] ss:$16 sps:$4 sm:$0xff]  }
 0x206   :  { %3091 = vmatpush1.bf16.msra.mxu1 %v4260_v18  ;;  %2928 = vmatprep.subr.bf16.mxu0 %v4265_v19  ;;  %v4346_v18 = vld [vmem:[#allocation10 + $0x66c] ss:$16 sps:$4 sm:$0xff]   ;;  %v4341_v19 = vld [vmem:[#allocation10 + $0x660] ss:$16 sps:$4 sm:$0xff]  }
 0x207   :  { %3092 = vmatprep.subr.bf16.mxu1 %v4268_v58  ;;  %v4344_v58 = vld [vmem:[#allocation10 + $0x668] ss:$16 sps:$4 sm:$0xff]  }
 0x209   :  { %2929 = vmatpush1.bf16.msra.mxu0 %v4263_v59  ;;  %v4349_v59 = vld [vmem:[#allocation10 + $0x684] ss:$16 sps:$4 sm:$0xff]  }
 0x20a   :  { %3093 = vmatpush1.bf16.msra.mxu1 %v4266_v60  ;;  %2930 = vmatprep.subr.bf16.mxu0 %v4271_v20  ;;  %v4352_v60 = vld [vmem:[#allocation10 + $0x68c] ss:$16 sps:$4 sm:$0xff]   ;;  %v4347_v20 = vld [vmem:[#allocation10 + $0x680] ss:$16 sps:$4 sm:$0xff]  }
 0x20b   :  { %3094 = vmatprep.subr.bf16.mxu1 %v4274_v61  ;;  %v4350_v61 = vld [vmem:[#allocation10 + $0x688] ss:$16 sps:$4 sm:$0xff]  }
 0x20d   :  { %2931 = vmatpush1.bf16.msra.mxu0 %v4269_v62  ;;  %v4355_v62 = vld [vmem:[#allocation10 + $0x6a4] ss:$16 sps:$4 sm:$0xff]  }
 0x20e   :  { %3095 = vmatpush1.bf16.msra.mxu1 %v4272_v63  ;;  %2932 = vmatprep.subr.bf16.mxu0 %v4277_v1  ;;  %v4358_v63 = vld [vmem:[#allocation10 + $0x6ac] ss:$16 sps:$4 sm:$0xff]   ;;  %v4353_v1 = vld [vmem:[#allocation10 + $0x6a0] ss:$16 sps:$4 sm:$0xff]  }
 0x20f   :  { %3096 = vmatprep.subr.bf16.mxu1 %v4280_v2  ;;  %v4356_v2 = vld [vmem:[#allocation10 + $0x6a8] ss:$16 sps:$4 sm:$0xff]  }
 0x211   :  { %2933 = vmatpush1.bf16.msra.mxu0 %v4275_v3  ;;  %v4361_v3 = vld [vmem:[#allocation10 + $0x6c4] ss:$16 sps:$4 sm:$0xff]  }
 0x212   :  { %3097 = vmatpush1.bf16.msra.mxu1 %v4278_v4  ;;  %2934 = vmatprep.subr.bf16.mxu0 %v4283_v5  ;;  %v4364_v4 = vld [vmem:[#allocation10 + $0x6cc] ss:$16 sps:$4 sm:$0xff]   ;;  %v4359_v5 = vld [vmem:[#allocation10 + $0x6c0] ss:$16 sps:$4 sm:$0xff]  }
 0x213   :  { %3098 = vmatprep.subr.bf16.mxu1 %v4286_v6  ;;  %v4362_v6 = vld [vmem:[#allocation10 + $0x6c8] ss:$16 sps:$4 sm:$0xff]  }
 0x215   :  { %2935 = vmatpush1.bf16.msra.mxu0 %v4281_v7  ;;  %v4367_v7 = vld [vmem:[#allocation10 + $0x6e4] ss:$16 sps:$4 sm:$0xff]  }
 0x216   :  { %3099 = vmatpush1.bf16.msra.mxu1 %v4284_v8  ;;  %2936 = vmatprep.subr.bf16.mxu0 %v4289_v10  ;;  %v4370_v8 = vld [vmem:[#allocation10 + $0x6ec] ss:$16 sps:$4 sm:$0xff]   ;;  %v4365_v10 = vld [vmem:[#allocation10 + $0x6e0] ss:$16 sps:$4 sm:$0xff]  }
 0x217   :  { %3100 = vmatprep.subr.bf16.mxu1 %v4292_v11  ;;  %v4368_v11 = vld [vmem:[#allocation10 + $0x6e8] ss:$16 sps:$4 sm:$0xff]  }
 0x219   :  { %2937 = vmatpush1.bf16.msra.mxu0 %v4287_v13  ;;  %v4373_v13 = vld [vmem:[#allocation10 + $0x704] ss:$16 sps:$4 sm:$0xff]  }
 0x21a   :  { %3101 = vmatpush1.bf16.msra.mxu1 %v4290_v14  ;;  %2938 = vmatprep.subr.bf16.mxu0 %v4295_v16  ;;  %v4376_v14 = vld [vmem:[#allocation10 + $0x70c] ss:$16 sps:$4 sm:$0xff]   ;;  %v4371_v16 = vld [vmem:[#allocation10 + $0x700] ss:$16 sps:$4 sm:$0xff]  }
 0x21b   :  { %3102 = vmatprep.subr.bf16.mxu1 %v4298_v21  ;;  %v4374_v21 = vld [vmem:[#allocation10 + $0x708] ss:$16 sps:$4 sm:$0xff]  }
 0x21d   :  { %2939 = vmatpush1.bf16.msra.mxu0 %v4293_v22  ;;  %v4379_v22 = vld [vmem:[#allocation10 + $0x724] ss:$16 sps:$4 sm:$0xff]  }
 0x21e   :  { %3103 = vmatpush1.bf16.msra.mxu1 %v4296_v23  ;;  %2940 = vmatprep.subr.bf16.mxu0 %v4301_v24  ;;  %v4382_v23 = vld [vmem:[#allocation10 + $0x72c] ss:$16 sps:$4 sm:$0xff]   ;;  %v4377_v24 = vld [vmem:[#allocation10 + $0x720] ss:$16 sps:$4 sm:$0xff]  }
 0x21f   :  { %3104 = vmatprep.subr.bf16.mxu1 %v4304_v25  ;;  %v4380_v25 = vld [vmem:[#allocation10 + $0x728] ss:$16 sps:$4 sm:$0xff]  }
 0x221   :  { %2941 = vmatpush1.bf16.msra.mxu0 %v4299_v15  ;;  %v4385_v15 = vld [vmem:[#allocation10 + $0x744] ss:$16 sps:$4 sm:$0xff]  }
 0x222   :  { %3105 = vmatpush1.bf16.msra.mxu1 %v4302_v26  ;;  %2942 = vmatprep.subr.bf16.mxu0 %v4307_v27  ;;  %v4388_v26 = vld [vmem:[#allocation10 + $0x74c] ss:$16 sps:$4 sm:$0xff]   ;;  %v4383_v27 = vld [vmem:[#allocation10 + $0x740] ss:$16 sps:$4 sm:$0xff]  }
 0x223   :  { %3106 = vmatprep.subr.bf16.mxu1 %v4310_v31  ;;  %v4386_v31 = vld [vmem:[#allocation10 + $0x748] ss:$16 sps:$4 sm:$0xff]  }
 0x225   :  { %2943 = vmatpush1.bf16.msra.mxu0 %v4305_v12  ;;  %v4391_v12 = vld [vmem:[#allocation10 + $0x764] ss:$16 sps:$4 sm:$0xff]  }
 0x226   :  { %3107 = vmatpush1.bf16.msra.mxu1 %v4308_v33  ;;  %2944 = vmatprep.subr.bf16.mxu0 %v4313_v34  ;;  %v4394_v33 = vld [vmem:[#allocation10 + $0x76c] ss:$16 sps:$4 sm:$0xff]   ;;  %v4389_v34 = vld [vmem:[#allocation10 + $0x760] ss:$16 sps:$4 sm:$0xff]  }
 0x227   :  { %3108 = vmatprep.subr.bf16.mxu1 %v4316_v39  ;;  %v4392_v39 = vld [vmem:[#allocation10 + $0x768] ss:$16 sps:$4 sm:$0xff]  }
 0x229   :  { %2945 = vmatpush1.bf16.msra.mxu0 %v4311_v40  ;;  %v4397_v40 = vld [vmem:[#allocation10 + $0x784] ss:$16 sps:$4 sm:$0xff]  }
 0x22a   :  { %3109 = vmatpush1.bf16.msra.mxu1 %v4314_v41  ;;  %2946 = vmatprep.subr.bf16.mxu0 %v4319_v42  ;;  %v4400_v41 = vld [vmem:[#allocation10 + $0x78c] ss:$16 sps:$4 sm:$0xff]   ;;  %v4395_v42 = vld [vmem:[#allocation10 + $0x780] ss:$16 sps:$4 sm:$0xff]  }
 0x22b   :  { %3110 = vmatprep.subr.bf16.mxu1 %v4322_v43  ;;  %v4398_v43 = vld [vmem:[#allocation10 + $0x788] ss:$16 sps:$4 sm:$0xff]  }
 0x22d   :  { %2947 = vmatpush1.bf16.msra.mxu0 %v4317_v54  ;;  %v4403_v54 = vld [vmem:[#allocation10 + $0x7a4] ss:$16 sps:$4 sm:$0xff]  }
 0x22e   :  { %3111 = vmatpush1.bf16.msra.mxu1 %v4320_v44  ;;  %2957 = vmatprep.subr.bf16.mxu0 %v4325_v45  ;;  %v4401_v44 = vld [vmem:[#allocation10 + $0x7a0] ss:$16 sps:$4 sm:$0xff]   ;;  %v4404_v45 = vld [vmem:[#allocation10 + $0x7a8] ss:$16 sps:$4 sm:$0xff]  }
 0x22f   :  { %3121 = vmatprep.subr.bf16.mxu1 %v4328_v46  ;;  %v4409_v46 = vld [vmem:[#allocation10 + $0x7c4] ss:$16 sps:$4 sm:$0xff]  }
 0x230   :  { %2949 = vmatmul.mubr.bf16.vlgmr.msra.gmra.mrb[16].mxu0 %v1272_v50 }
 0x231   :  { %3113 = vmatmul.mubr.bf16.vlgmr.msra.gmra.mrb[16].mxu1 %v1272_v50  ;;  %2958 = vmatpush1.bf16.msra.mxu0 %v4323_v48  ;;  %v4407_v48 = vld [vmem:[#allocation10 + $0x7c0] ss:$16 sps:$4 sm:$0xff]   ;;  %v4410_v50 = vld [vmem:[#allocation10 + $0x7c8] ss:$16 sps:$4 sm:$0xff]  }
 0x232   :  { %2989 = vmatprep.mubr.bf16.mxu0 %v1275_v53  ;;  %3122 = vmatpush1.bf16.msra.mxu1 %v4326_v51  ;;  %v4415_v51 = vld [vmem:[#allocation10 + $0x7e4] ss:$16 sps:$4 sm:$0xff]  }
 0x233   :  { %3153 = vmatprep.mubr.bf16.mxu1 %v1275_v53  ;;  %2959 = vmatprep.subr.bf16.mxu0 %v4331_v52  ;;  %v4418_v52 = vld [vmem:[#allocation10 + $0x7ec] ss:$16 sps:$4 sm:$0xff]   ;;  %v4413_v53 = vld [vmem:[#allocation10 + $0x7e0] ss:$16 sps:$4 sm:$0xff]  }
 0x234   :  { %3123 = vmatprep.subr.bf16.mxu1 %v4334_v30  ;;  %v1266_v30 = vmax.f32 %v4824_v28, 0.0  ;;  %v4426_v28 = vld [vmem:[#allocation11 + $0x88] sm:$0xff]  }
 0x235   :  { %2960 = vmatpush1.bf16.msra.mxu0 %v4329_v49  ;;  %v4416_v49 = vld [vmem:[#allocation10 + $0x7e8] ss:$16 sps:$4 sm:$0xff]  }
 0x236   :  { %3124 = vmatpush1.bf16.msra.mxu1 %v4332_v55  ;;  %2961 = vmatprep.subr.bf16.mxu0 %v4337_v29  ;;  %v4419_v55 = vld [vmem:[#allocation11 + $0x40] sm:$0xff]  }
 0x237   :  { %3125 = vmatprep.subr.bf16.mxu1 %v4340_v56  ;;  %v4420_v29 = vld [vmem:[#allocation11 + $0xc0] sm:$0xff]  }
 0x238   :  { %v4421_v56 = vld [vmem:[#allocation11] sm:$0xff]  }
 0x239   :  { %2962 = vmatpush1.bf16.msra.mxu0 %v4335_v17  ;;  %v1274_v17 = vpack.c.bf16 %v1266_v30, %v1266_v30 }
 0x23a   :  { %3126 = vmatpush1.bf16.msra.mxu1 %v4338_v32  ;;  %2963 = vmatprep.subr.bf16.mxu0 %v4343_v57  ;;  %v4422_v32 = vld [vmem:[#allocation11 + $0x80] sm:$0xff]   ;;  %v4423_v57 = vld [vmem:[#allocation11 + $0x48] sm:$0xff]  }
 0x23b   :  { %3127 = vmatprep.subr.bf16.mxu1 %v4346_v18  ;;  %v4424_v18 = vld [vmem:[#allocation11 + $0xc8] sm:$0xff]  }
 0x23d   :  { %2964 = vmatpush1.bf16.msra.mxu0 %v4341_v19  ;;  %v4425_v19 = vld [vmem:[#allocation11 + $0x8] sm:$0xff]  }
 0x23e   :  { %3128 = vmatpush1.bf16.msra.mxu1 %v4344_v58  ;;  %2965 = vmatprep.subr.bf16.mxu0 %v4349_v59  ;;  %v4427_v58 = vld [vmem:[#allocation11 + $0x50] sm:$0xff]  }
 0x23f   :  { %3129 = vmatprep.subr.bf16.mxu1 %v4352_v60  ;;  %v4428_v59 = vld [vmem:[#allocation11 + $0xd0] sm:$0xff]  }
 0x240   :  { %v4429_v60 = vld [vmem:[#allocation11 + $0x10] sm:$0xff]  }
 0x241   :  { %2966 = vmatpush1.bf16.msra.mxu0 %v4347_v20  ;;  %v4430_v20 = vld [vmem:[#allocation11 + $0x90] sm:$0xff]  }
 0x242   :  { %3130 = vmatpush1.bf16.msra.mxu1 %v4350_v61  ;;  %2967 = vmatprep.subr.bf16.mxu0 %v4355_v62  ;;  %v4431_v61 = vld [vmem:[#allocation11 + $0x58] sm:$0xff]  }
 0x243   :  { %3131 = vmatprep.subr.bf16.mxu1 %v4358_v63  ;;  %v4432_v62 = vld [vmem:[#allocation11 + $0xd8] sm:$0xff]  }
 0x244   :  { %v4433_v63 = vld [vmem:[#allocation11 + $0x18] sm:$0xff]  }
 0x245   :  { %2968 = vmatpush1.bf16.msra.mxu0 %v4353_v1  ;;  %v4434_v1 = vld [vmem:[#allocation11 + $0x98] sm:$0xff]  }
 0x246   :  { %3132 = vmatpush1.bf16.msra.mxu1 %v4356_v2  ;;  %2969 = vmatprep.subr.bf16.mxu0 %v4361_v3  ;;  %v4435_v2 = vld [vmem:[#allocation11 + $0x60] sm:$0xff]  }
 0x247   :  { %3133 = vmatprep.subr.bf16.mxu1 %v4364_v4  ;;  %v4436_v3 = vld [vmem:[#allocation11 + $0xe0] sm:$0xff]  }
 0x248   :  { %v4437_v4 = vld [vmem:[#allocation11 + $0x20] sm:$0xff]  }
 0x249   :  { %2970 = vmatpush1.bf16.msra.mxu0 %v4359_v5  ;;  %v4438_v5 = vld [vmem:[#allocation11 + $0xa0] sm:$0xff]  }
 0x24a   :  { %3134 = vmatpush1.bf16.msra.mxu1 %v4362_v6  ;;  %2971 = vmatprep.subr.bf16.mxu0 %v4367_v7  ;;  %v4439_v6 = vld [vmem:[#allocation11 + $0x68] sm:$0xff]  }
 0x24b   :  { %3135 = vmatprep.subr.bf16.mxu1 %v4370_v8  ;;  %v4440_v7 = vld [vmem:[#allocation11 + $0xe8] sm:$0xff]  }
 0x24c   :  { %v4441_v8 = vld [vmem:[#allocation11 + $0x28] sm:$0xff]  }
 0x24d   :  { %2972 = vmatpush1.bf16.msra.mxu0 %v4365_v10  ;;  %v4442_v10 = vld [vmem:[#allocation11 + $0xa8] sm:$0xff]  }
 0x24e   :  { %3136 = vmatpush1.bf16.msra.mxu1 %v4368_v11  ;;  %2973 = vmatprep.subr.bf16.mxu0 %v4373_v13  ;;  %v4443_v11 = vld [vmem:[#allocation11 + $0x70] sm:$0xff]  }
 0x24f   :  { %3137 = vmatprep.subr.bf16.mxu1 %v4376_v14  ;;  %v4444_v13 = vld [vmem:[#allocation11 + $0xf0] sm:$0xff]  }
 0x250   :  { %v4445_v14 = vld [vmem:[#allocation11 + $0x30] sm:$0xff]  }
 0x251   :  { %2974 = vmatpush1.bf16.msra.mxu0 %v4371_v16  ;;  %v4446_v16 = vld [vmem:[#allocation11 + $0xb0] sm:$0xff]  }
 0x252   :  { %3138 = vmatpush1.bf16.msra.mxu1 %v4374_v21  ;;  %2975 = vmatprep.subr.bf16.mxu0 %v4379_v22  ;;  %v4447_v21 = vld [vmem:[#allocation11 + $0x78] sm:$0xff]  }
 0x253   :  { %3139 = vmatprep.subr.bf16.mxu1 %v4382_v23  ;;  %v4448_v22 = vld [vmem:[#allocation11 + $0xf8] sm:$0xff]  }
 0x254   :  { %v4449_v23 = vld [vmem:[#allocation11 + $0x38] sm:$0xff]  }
 0x255   :  { %2976 = vmatpush1.bf16.msra.mxu0 %v4377_v24  ;;  %v4450_v24 = vld [vmem:[#allocation11 + $0xb8] sm:$0xff]  }
 0x256   :  { %3140 = vmatpush1.bf16.msra.mxu1 %v4380_v25  ;;  %2977 = vmatprep.subr.bf16.mxu0 %v4385_v15  ;;  %v1532_v25 = vld [vmem:[%s4869_s6] sm:$0xf] }
 0x257   :  { %3141 = vmatprep.subr.bf16.mxu1 %v4388_v26  ;;  %v1537_v15 = vrot.slane %v1532_v25, %v1214_v35  ;;  %v1545_v26 = vrot.slane %v1532_v25, %v1222_v36 }
 0x259   :  { %2978 = vmatpush1.bf16.msra.mxu0 %v4383_v27  ;;  %v1541_v27 = vrot.slane %v1532_v25, %v1218_v37 }
 0x25a   :  { %3142 = vmatpush1.bf16.msra.mxu1 %v4386_v31  ;;  %2979 = vmatprep.subr.bf16.mxu0 %v4391_v12  ;;  %v1549_v31 = vrot.slane %v1532_v25, %v1226_v38 }
 0x25b   :  { %3143 = vmatprep.subr.bf16.mxu1 %v4394_v33 }
 0x25d   :  { %2980 = vmatpush1.bf16.msra.mxu0 %v4389_v34 }
 0x25e   :  { %3144 = vmatpush1.bf16.msra.mxu1 %v4392_v39  ;;  %2981 = vmatprep.subr.bf16.mxu0 %v4397_v40 }
 0x25f   :  { %3145 = vmatprep.subr.bf16.mxu1 %v4400_v41 }
 0x261   :  { %2982 = vmatpush1.bf16.msra.mxu0 %v4395_v42 }
 0x262   :  { %3146 = vmatpush1.bf16.msra.mxu1 %v4398_v43  ;;  %2983 = vmatprep.subr.bf16.mxu0 %v4403_v54 }
 0x263   :  { %3147 = vmatprep.subr.bf16.mxu1 %v4406_v0 }
 0x265   :  { %2984 = vmatpush1.bf16.msra.mxu0 %v4401_v44 }
 0x266   :  { %3148 = vmatpush1.bf16.msra.mxu1 %v4404_v45  ;;  %2985 = vmatprep.subr.bf16.mxu0 %v4409_v46 }
 0x267   :  { %3149 = vmatprep.subr.bf16.mxu1 %v4412_v47 }
 0x269   :  { %2986 = vmatpush1.bf16.msra.mxu0 %v4407_v48 }
 0x26a   :  { %3150 = vmatpush1.bf16.msra.mxu1 %v4410_v50  ;;  %2987 = vmatprep.subr.bf16.mxu0 %v4415_v51 }
 0x26b   :  { %3151 = vmatprep.subr.bf16.mxu1 %v4418_v52  ;;  %v3916_v52 = vld [vmem:[%s4871_s8] ss:$0 sm:$0xff] }
 0x26d   :  { %2988 = vmatpush1.bf16.msra.mxu0 %v4413_v53 }
 0x26e   :  { %3152 = vmatpush1.bf16.msra.mxu1 %v4416_v49  ;;  %3949 = vmatprep.subr.bf16.mxu0 %v4419_v55 }
 0x26f   :  { %3971 = vmatprep.subr.bf16.mxu1 %v4420_v29 }
 0x270   :  { %2990 = vmatmul.mubr.bf16.vlgmr.msra.gmra.mrb[16].mxu0 %v1274_v17 }
 0x271   :  { %3154 = vmatmul.mubr.bf16.vlgmr.msra.gmra.mrb[16].mxu1 %v1274_v17  ;;  %3950 = vmatpush3.bf16.msra.mxu0 %v4421_v56 }
 0x272   :  { %3972 = vmatpush3.bf16.msra.mxu1 %v4422_v32  ;;  %3951 = vmatprep.subr.bf16.mxu0 %v4423_v57 }
 0x273   :  { %3973 = vmatprep.subr.bf16.mxu1 %v4424_v18 }
 0x275   :  { %3952 = vmatpush3.bf16.msra.mxu0 %v4425_v19 }
 0x276   :  { %3974 = vmatpush3.bf16.msra.mxu1 %v4426_v28  ;;  %3953 = vmatprep.subr.bf16.mxu0 %v4427_v58 }
 0x277   :  { %3975 = vmatprep.subr.bf16.mxu1 %v4428_v59 }
 0x279   :  { %3954 = vmatpush3.bf16.msra.mxu0 %v4429_v60 }
 0x27a   :  { %3976 = vmatpush3.bf16.msra.mxu1 %v4430_v20  ;;  %3955 = vmatprep.subr.bf16.mxu0 %v4431_v61 }
 0x27b   :  { %3977 = vmatprep.subr.bf16.mxu1 %v4432_v62 }
 0x27d   :  { %3956 = vmatpush3.bf16.msra.mxu0 %v4433_v63 }
 0x27e   :  { %3978 = vmatpush3.bf16.msra.mxu1 %v4434_v1  ;;  %3957 = vmatprep.subr.bf16.mxu0 %v4435_v2 }
 0x27f   :  { %3979 = vmatprep.subr.bf16.mxu1 %v4436_v3 }
 0x281   :  { %3958 = vmatpush3.bf16.msra.mxu0 %v4437_v4 }
 0x282   :  { %3980 = vmatpush3.bf16.msra.mxu1 %v4438_v5  ;;  %3959 = vmatprep.subr.bf16.mxu0 %v4439_v6 }
 0x283   :  { %3981 = vmatprep.subr.bf16.mxu1 %v4440_v7 }
 0x285   :  { %3960 = vmatpush3.bf16.msra.mxu0 %v4441_v8 }
 0x286   :  { %3982 = vmatpush3.bf16.msra.mxu1 %v4442_v10  ;;  %3961 = vmatprep.subr.bf16.mxu0 %v4443_v11 }
 0x287   :  { %3983 = vmatprep.subr.bf16.mxu1 %v4444_v13 }
 0x289   :  { %3962 = vmatpush3.bf16.msra.mxu0 %v4445_v14 }
 0x28a   :  { %3984 = vmatpush3.bf16.msra.mxu1 %v4446_v16  ;;  %3963 = vmatprep.subr.bf16.mxu0 %v4447_v21 }
 0x28b   :  { %3985 = vmatprep.subr.bf16.mxu1 %v4448_v22 }
 0x28d   :  { %3964 = vmatpush3.bf16.msra.mxu0 %v4449_v23 }
 0x28e   :  { %3986 = vmatpush3.bf16.msra.mxu1 %v4450_v24 }
 0x343   :  { %v2991_v12 = vpop.f32.mrb[16].mxu0 }
 0x344   :  { %v3993_v33 = vadd.f32 %v2991_v12, %v1537_v15  ;;  %v3155_v34 = vpop.f32.mrb[16].mxu1  ;;  %v2993_v39 = vpop.f32.mrb[17].mxu0 }
 0x345   :  { %v3995_v40 = vadd.f32 %v3155_v34, %v1545_v26  ;;  %v3994_v41 = vadd.f32 %v2993_v39, %v1541_v27  ;;  %v3157_v42 = vpop.f32.mrb[17].mxu1  ;;  %v2995_v43 = vpop.f32.mrb[18].mxu0 }
 0x346   :  { %v3162_v54 = vmax.f32 %v3993_v33, 0.0  ;;  %v3996_v0 = vadd.f32 %v3157_v42, %v1549_v31  ;;  %v3159_v35 = vpop.f32.mrb[18].mxu1  ;;  %v2996_v44 = vpop.f32.mrb[19].mxu0 }
 0x347   :  { %v3164_v45 = vmax.f32 %v3995_v40, 0.0  ;;  %v3163_v36 = vmax.f32 %v3994_v41, 0.0  ;;  %v3160_v46 = vpop.f32.mrb[19].mxu1 }
 0x348   :  { %v3165_v47 = vmax.f32 %v3996_v0, 0.0  ;;  %v3166_v48 = vpack.c.bf16 %v3162_v54, %v3162_v54 }
 0x349   :  { %v3167_v37 = vpack.c.bf16 %v3163_v36, %v3163_v36  ;;  %v3168_v38 = vpack.c.bf16 %v3164_v45, %v3164_v45 }
 0x34a   :  { %v3169_v9 = vpack.c.bf16 %v3165_v47, %v3165_v47 }
 0x34b   :  { %3465 = vmatprep.mubr.bf16.mxu0 %v3167_v37 }
 0x34c   :  { %3505 = vmatprep.mubr.bf16.mxu1 %v3169_v9  ;;  %3466 = vmatmul.mubr.bf16.vlgmr.msra.gmra.mrb[20].mxu0 %v3166_v48 }
 0x34d   :  { %3506 = vmatmul.mubr.bf16.vlgmr.msra.gmra.mrb[20].mxu1 %v3168_v38 }
 0x41f   :  { %v3965_v50 = vpop.f32.mrb[20].mxu0 }
 0x420   :  { %v3987_v51 = vpop.f32.mrb[20].mxu1  ;;  %v3966_v53 = vpop.f32.mrb[21].mxu0 }
 0x421   :  { %v3967_v30 = vadd.f32 %v3966_v53, %v3965_v50  ;;  %v3988_v49 = vpop.f32.mrb[21].mxu1  ;;  %v3968_v55 = vpop.f32.mrb[22].mxu0 }
 0x422   :  { %v3989_v29 = vadd.f32 %v3988_v49, %v3987_v51  ;;  %v3990_v56 = vpop.f32.mrb[22].mxu1  ;;  %v3969_v17 = vpop.f32.mrb[23].mxu0 }
 0x423   :  { %v3468_v32 = vadd.f32 %v3967_v30, %v3916_v52  ;;  %v3991_v57 = vpop.f32.mrb[23].mxu1 }
 0x425   :  { %v3508_v18 = vadd.f32 %v3989_v29, %v3468_v32 }
 0x427   :  { %3513 = vst [vmem:[#allocation13] sm:$0xff] %v3508_v18 }
 0x428   :  { %4594 = shalt.err (!%p4591_p10)
}
 0x429   :  { %s4595_s22 = scalar_lea.hbm %s4872_s9, 128 }
 0x42a   :  { %p4596_p11 = scmp.ne.s32.totalorder %s4872_s9, %s4595_s22  ;;  %p4599_p12 = scmp.lt.u32.totalorder %s4595_s22, %s4872_s9 }
 0x42c   :  { %p4601_p13 = pnand %p4599_p12, %p4596_p11 }
 0x42e   :  { %4604 = shalt.err (!%p4601_p13)
}
 0x42f   :  { %3523 = dma.vmem_to_hbm [thread:$0]  %s3521_s21, 128, %s4872_s9, [#allocation4]  }
 0x430   :  { %4613 = dma.done.wait [#allocation4], 128  }
 0x431   :  { %4614 = vsyncadd [#allocation4], 4294967168 }
 0x432   :  { %3527 = vsyncpa [#allocation3], 1 }
 0x433   :  { %3528 = vsyncpa [#allocation6], 1 }
 0x434   :  { %3529 = vsyncpa [#allocation9], 1 }
 0x435   :  { %3530 = vsyncpa [#allocation12], 1 }
 0x436   :  { %3531 = vsyncpa [#allocation4], 1 }

</bundles_post_ra>
